<compile_context>
chip_gen: v7x
topology: tpu7x:2x2x1
jax: 0.10.0
libtpu: 0.0.40
codegen_flags: <defaults>
</compile_context>

<pallas_src>
import functools

import jax
import jax.numpy as jnp
from jax.experimental import pallas as pl
from jax.experimental.pallas import tpu as pltpu

LANE = 128
_BN_EPS = 1e-5
_VMEM_LIMIT = 32 * 1024 * 1024  # explicit scoped-VMEM budget (safe on v5e/v6e/v7x)


def _round_up(x, m):
    return (x + m - 1) // m * m


def _apply_act(x, act_fun):
    if act_fun == "relu":
        return jnp.maximum(x, 0.0)
    if act_fun == "leakyrelu":
        return jnp.where(x >= 0, x, 0.01 * x)
    if act_fun == "elu":
        return jnp.where(x >= 0, x, jnp.expm1(x))
    if act_fun == "mish":
        return x * jnp.tanh(jax.nn.softplus(x))
    raise ValueError(f"Unsupported activation function: {act_fun}")


# ----------------------------------------------------------------------------
# Kernel 1: fused matmul + bias + activation + per-tile BatchNorm statistics
#   a_ref     : (TM, K)      bf16  im2col patches (tap-major: kh, kw, c_in)
#   b_ref     : (K, Cp)      bf16  conv weight, C_out zero-padded to Cp (mult of 128)
#   bias_ref  : (1, Cp)      f32
#   y_ref     : (TM, Cp)     f32   act(A @ B + bias)        (lane dense: Cp % 128 == 0)
#   stats_ref : (1, 2, Cp)   f32   per-tile [sum, sum^2] over valid rows (for BN)
# ----------------------------------------------------------------------------
def _conv_act_stats_kernel(a_ref, b_ref, bias_ref, y_ref, stats_ref, *,
                           tm, m_valid, act_fun):
    i = pl.program_id(0)
    acc = jnp.dot(a_ref[...], b_ref[...], preferred_element_type=jnp.float32)
    acc = _apply_act(acc + bias_ref[...], act_fun)
    y_ref[...] = acc
    # Mask out zero-padded M rows so they do not pollute the batch statistics.
    row = jax.lax.broadcasted_iota(jnp.int32, acc.shape, 0) + i * tm
    acc_valid = jnp.where(row < m_valid, acc, 0.0)
    s1 = jnp.sum(acc_valid, axis=0, keepdims=True)               # (1, Cp)
    s2 = jnp.sum(acc_valid * acc_valid, axis=0, keepdims=True)   # (1, Cp)
    stats_ref[...] = jnp.concatenate([s1, s2], axis=0)[None]     # (1, 2, Cp)


def conv_matmul_act_stats(a, bmat, bias, m_valid, *, act_fun="relu", tm=512):
    """(M, K) @ (K, Cp) + bias, activation, per-tile BN sum/sum^2. Tiled over M."""
    m, k = a.shape
    k2, cp = bmat.shape
    assert k == k2 and cp % LANE == 0
    tm = min(tm, _round_up(m, 8))
    mpad = _round_up(m, tm)
    if mpad != m:
        a = jnp.pad(a, ((0, mpad - m), (0, 0)))
    grid = (mpad // tm,)
    y, stats = pl.pallas_call(
        functools.partial(_conv_act_stats_kernel, tm=tm, m_valid=m_valid,
                          act_fun=act_fun),
        out_shape=(jax.ShapeDtypeStruct((mpad, cp), jnp.float32),
                   jax.ShapeDtypeStruct((grid[0], 2, cp), jnp.float32)),
        grid=grid,
        in_specs=[pl.BlockSpec((tm, k), lambda i: (i, 0)),
                  pl.BlockSpec((k, cp), lambda i: (0, 0)),
                  pl.BlockSpec((1, cp), lambda i: (0, 0))],
        out_specs=(pl.BlockSpec((tm, cp), lambda i: (i, 0)),
                   pl.BlockSpec((1, 2, cp), lambda i: (i, 0, 0))),
        compiler_params=pltpu.CompilerParams(
            dimension_semantics=("parallel",),
            vmem_limit_bytes=_VMEM_LIMIT),
    )(a, bmat, bias)
    return y, stats


# ----------------------------------------------------------------------------
# Kernel 2: tiled per-channel affine (BatchNorm scale/shift application)
# ----------------------------------------------------------------------------
def _affine_kernel(x_ref, scale_ref, shift_ref, o_ref):
    o_ref[...] = x_ref[...] * scale_ref[...] + shift_ref[...]


def apply_channel_affine(x, scale, shift, *, tm=512):
    m, cp = x.shape
    assert cp % LANE == 0
    tm = min(tm, _round_up(m, 8))
    mpad = _round_up(m, tm)
    if mpad != m:
        x = jnp.pad(x, ((0, mpad - m), (0, 0)))
    grid = (mpad // tm,)
    out = pl.pallas_call(
        _affine_kernel,
        out_shape=jax.ShapeDtypeStruct((mpad, cp), jnp.float32),
        grid=grid,
        in_specs=[pl.BlockSpec((tm, cp), lambda i: (i, 0)),
                  pl.BlockSpec((1, cp), lambda i: (0, 0)),
                  pl.BlockSpec((1, cp), lambda i: (0, 0))],
        out_specs=pl.BlockSpec((tm, cp), lambda i: (i, 0)),
        compiler_params=pltpu.CompilerParams(
            dimension_semantics=("parallel",),
            vmem_limit_bytes=_VMEM_LIMIT),
    )(x, scale, shift)
    return out[:m]


# ----------------------------------------------------------------------------
# Host-side glue (patch extraction, weight packing, BN finalization)
# ----------------------------------------------------------------------------
def _im2col_3x3(x_nhwc, scale=None, shift=None, dtype=jnp.bfloat16):
    """Zero-pad by 1 and extract 3x3 patches.

    Returns A of shape (N*H*W, 9*C) with columns ordered (kh, kw, c) — tap-major,
    so no transpose of the big activation tensor is needed (the tiny weight tensor is
    permuted to match instead).  An optional per-channel affine (the previous layer's
    BatchNorm scale/shift) is applied *before* the zero padding; XLA fuses it into the
    patch gather so it costs no extra HBM pass.
    """
    if scale is not None:
        x_nhwc = x_nhwc * scale + shift
    n, h, w, c = x_nhwc.shape
    xp = jnp.pad(x_nhwc, ((0, 0), (1, 1), (1, 1), (0, 0)))
    taps = [xp[:, di:di + h, dj:dj + w, :] for di in range(3) for dj in range(3)]
    a = jnp.stack(taps, axis=3)                  # (n, h, w, 9, c) — tap-major
    return a.reshape(n * h * w, 9 * c).astype(dtype)


def _prep_conv_weights(w, b, cp, dtype=jnp.bfloat16):
    # w: (C_out, C_in, 3, 3) PyTorch layout -> (kh, kw, C_in, C_out), C_out padded to cp.
    cout = w.shape[0]
    wm = jnp.transpose(w, (2, 3, 1, 0)).reshape(-1, cout)
    wm = jnp.pad(wm, ((0, 0), (0, cp - cout))).astype(dtype)
    bp = jnp.pad(b, (0, cp - cout)).reshape(1, cp).astype(jnp.float32)
    return wm, bp


def _bn_scale_shift(stats, gamma, beta, count, cp):
    """Train-mode BatchNorm: batch mean, biased variance, eps=1e-5 -> scale/shift."""
    s = jnp.sum(stats, axis=0)                    # (2, cp)  reduce per-tile partials
    mean = s[0] / count
    var = s[1] / count - mean * mean
    inv = jax.lax.rsqrt(var + _BN_EPS)
    gp = jnp.pad(gamma, (0, cp - gamma.shape[0]))
    bp = jnp.pad(beta, (0, cp - beta.shape[0]))
    scale = gp * inv
    shift = bp - mean * scale
    return scale.reshape(1, cp), shift.reshape(1, cp)


# ----------------------------------------------------------------------------
# ConvBlock forward (matches the PyTorch module with act_fun='relu', norm='bn')
# ----------------------------------------------------------------------------
def conv_block_forward(params, x_nchw, act_fun="relu", normalization="bn"):
    if normalization != "bn":
        raise NotImplementedError("only normalization='bn' is implemented")
    n, _, h, w = x_nchw.shape
    x = jnp.transpose(x_nchw, (0, 2, 3, 1))          # NCHW -> NHWC
    cout = params["w1"].shape[0]
    cp = _round_up(cout, LANE)
    m = n * h * w

    # layer 1: conv + bias + act, BN batch-stat accumulation fused in the epilogue
    a1 = _im2col_3x3(x)
    w1, b1 = _prep_conv_weights(params["w1"], params["b1"], cp)
    y1, st1 = conv_matmul_act_stats(a1, w1, b1, m, act_fun=act_fun)
    sc1, sh1 = _bn_scale_shift(st1, params["g1"], params["be1"], m, cp)

    # layer 2: BN(1) scale/shift folded into the patch gather, then conv + bias + act
    y1_nhwc = y1[:m, :cout].reshape(n, h, w, cout)
    a2 = _im2col_3x3(y1_nhwc, scale=sc1[:, :cout], shift=sh1[:, :cout])
    w2, b2 = _prep_conv_weights(params["w2"], params["b2"], cp)
    y2, st2 = conv_matmul_act_stats(a2, w2, b2, m, act_fun=act_fun)
    sc2, sh2 = _bn_scale_shift(st2, params["g2"], params["be2"], m, cp)

    # final BN applied with a tiled, lane-dense elementwise kernel
    out = apply_channel_affine(y2, sc2, sh2)
    out = out[:m, :cout].reshape(n, h, w, cout)
    return jnp.transpose(out, (0, 3, 1, 2))          # back to NCHW


# ----------------------------------------------------------------------------
# Deterministic parameters + pure-JAX reference
# ----------------------------------------------------------------------------
def init_conv_block(key, ch_in, ch_out):
    k = jax.random.split(key, 8)
    return dict(
        w1=0.1 * jax.random.normal(k[0], (ch_out, ch_in, 3, 3), jnp.float32),
        b1=0.1 * jax.random.normal(k[1], (ch_out,), jnp.float32),
        g1=1.0 + 0.1 * jax.random.normal(k[2], (ch_out,), jnp.float32),
        be1=0.1 * jax.random.normal(k[3], (ch_out,), jnp.float32),
        w2=0.1 * jax.random.normal(k[4], (ch_out, ch_out, 3, 3), jnp.float32),
        b2=0.1 * jax.random.normal(k[5], (ch_out,), jnp.float32),
        g2=1.0 + 0.1 * jax.random.normal(k[6], (ch_out,), jnp.float32),
        be2=0.1 * jax.random.normal(k[7], (ch_out,), jnp.float32),
    )


def _reference_conv_block(params, x_nchw):
    def conv(x, w, b):
        y = jax.lax.conv_general_dilated(
            x, w, window_strides=(1, 1), padding=((1, 1), (1, 1)),
            dimension_numbers=("NCHW", "OIHW", "NCHW"),
            precision=jax.lax.Precision.HIGHEST)
        return y + b[None, :, None, None]

    def bn(x, g, be):
        mean = jnp.mean(x, axis=(0, 2, 3), keepdims=True)
        var = jnp.mean(jnp.square(x - mean), axis=(0, 2, 3), keepdims=True)
        return ((x - mean) * jax.lax.rsqrt(var + _BN_EPS)
                * g[None, :, None, None] + be[None, :, None, None])

    x = jnp.maximum(conv(x_nchw, params["w1"], params["b1"]), 0.0)
    x = bn(x, params["g1"], params["be1"])
    x = jnp.maximum(conv(x, params["w2"], params["b2"]), 0.0)
    x = bn(x, params["g2"], params["be2"])
    return x


if __name__ == "__main__":
    key = jax.random.PRNGKey(0)
    kx, kp = jax.random.split(key)
    N, CH_IN, H, W, CH_OUT = 2, 4, 16, 16, 32
    x = jax.random.normal(kx, (N, CH_IN, H, W), jnp.float32)     # NCHW, like PyTorch
    params = init_conv_block(kp, CH_IN, CH_OUT)

    fwd = jax.jit(conv_block_forward)
    out = fwd(params, x)
    jax.block_until_ready(out)

    assert out.shape == (N, CH_OUT, H, W)
    assert bool(jnp.all(jnp.isfinite(out)))

    # correctness vs. an f32 pure-JAX reference (bf16 MXU operands -> loose tolerance)
    ref = _reference_conv_block(params, x)
    max_err = float(jnp.max(jnp.abs(out - ref)))
    assert max_err < 0.25, f"mismatch vs reference: max abs err {max_err}"

    print("KERNEL_OK")
</pallas_src>

<mosaic_0001>
module attributes {stable_mosaic.version = 11 : i64} {
  func.func @_conv_act_stats_kernel(%arg0: i32, %arg1: memref<512x36xbf16, #tpu.memory_space<vmem>>, %arg2: memref<36x128xbf16, #tpu.memory_space<vmem>>, %arg3: memref<1x128xf32, #tpu.memory_space<vmem>>, %arg4: memref<512x128xf32, #tpu.memory_space<vmem>>, %arg5: memref<1x2x128xf32, #tpu.memory_space<vmem>>) attributes {dimension_semantics = [#tpu.dimension_semantics<parallel>], iteration_bounds = array<i64: 1>, scalar_prefetch = 0 : i64, scratch_operands = 0 : i64, tpu.core_type = #tpu.core_type<tc>, window_params = [{transform_indices = @transform_0, window_bounds = array<i64: 512, 36>}, {pipeline_mode = #tpu.pipeline_mode<synchronous>, transform_indices = @transform_1, window_bounds = array<i64: 36, 128>}, {pipeline_mode = #tpu.pipeline_mode<synchronous>, transform_indices = @transform_2, window_bounds = array<i64: 1, 128>}, {transform_indices = @transform_3, window_bounds = array<i64: 512, 128>}, {transform_indices = @transform_4, window_bounds = array<i64: 1, 2, 128>}]} {
    %c0 = arith.constant 0 : index
    %c0_0 = arith.constant 0 : index
    %0 = vector.load %arg1[%c0, %c0_0] : memref<512x36xbf16, #tpu.memory_space<vmem>>, vector<512x36xbf16>
    %c0_1 = arith.constant 0 : index
    %c0_2 = arith.constant 0 : index
    %1 = vector.load %arg2[%c0_1, %c0_2] : memref<36x128xbf16, #tpu.memory_space<vmem>>, vector<36x128xbf16>
    %cst = arith.constant dense<0.000000e+00> : vector<512x128xf32>
    %2 = tpu.matmul %0, %1, %cst {dimension_numbers = #tpu.dot_dimension_numbers<[1], [0], [0], [1], [0, 0, 1, 1], [], []>} : vector<512x36xbf16>, vector<36x128xbf16>, vector<512x128xf32> -> vector<512x128xf32>
    %c0_3 = arith.constant 0 : index
    %c0_4 = arith.constant 0 : index
    %3 = vector.load %arg3[%c0_3, %c0_4] : memref<1x128xf32, #tpu.memory_space<vmem>>, vector<1x128xf32>
    %4 = vector.broadcast %3 : vector<1x128xf32> to vector<512x128xf32>
    %5 = arith.addf %2, %4 : vector<512x128xf32>
    %cst_5 = arith.constant 0.000000e+00 : f32
    %6 = vector.broadcast %cst_5 : f32 to vector<512x128xf32>
    %7 = arith.maximumf %5, %6 : vector<512x128xf32>
    %c0_6 = arith.constant 0 : index
    %c0_7 = arith.constant 0 : index
    %8 = vector.load %arg4[%c0_6, %c0_7] : memref<512x128xf32, #tpu.memory_space<vmem>>, vector<512x128xf32>
    tpu.vector_store %arg4[%c0_6, %c0_7], %7 {strides = array<i32>} : memref<512x128xf32, #tpu.memory_space<vmem>>, vector<512x128xf32>,
    %9 = tpu.iota {dimensions = array<i32: 0>} : vector<512x128xi32>
    %c512_i32 = arith.constant 512 : i32
    %10 = arith.muli %arg0, %c512_i32 : i32
    %11 = vector.broadcast %10 : i32 to vector<512x128xi32>
    %12 = arith.addi %9, %11 : vector<512x128xi32>
    %c512_i32_8 = arith.constant 512 : i32
    %13 = vector.broadcast %c512_i32_8 : i32 to vector<512x128xi32>
    %14 = arith.cmpi slt, %12, %13 : vector<512x128xi32>
    %cst_9 = arith.constant 0.000000e+00 : f32
    %15 = vector.broadcast %cst_9 : f32 to vector<512x128xf32>
    %16 = arith.select %14, %7, %15 : vector<512x128xi1>, vector<512x128xf32>
    %cst_10 = arith.constant dense<0.000000e+00> : vector<128xf32>
    %17 = vector.multi_reduction <add>, %16, %cst_10 [0] : vector<512x128xf32> to vector<128xf32>
    %18 = vector.shape_cast %17 : vector<128xf32> to vector<1x128xf32>
    %19 = arith.mulf %16, %16 : vector<512x128xf32>
    %cst_11 = arith.constant dense<0.000000e+00> : vector<128xf32>
    %20 = vector.multi_reduction <add>, %19, %cst_11 [0] : vector<512x128xf32> to vector<128xf32>
    %21 = vector.shape_cast %20 : vector<128xf32> to vector<1x128xf32>
    %22 = tpu.concatenate %18, %21 in 0 : vector<1x128xf32>, vector<1x128xf32> -> vector<2x128xf32>
    %23 = vector.shape_cast %22 : vector<2x128xf32> to vector<1x2x128xf32>
    %c0_12 = arith.constant 0 : index
    %c0_13 = arith.constant 0 : index
    %c0_14 = arith.constant 0 : index
    %24 = vector.load %arg5[%c0_12, %c0_13, %c0_14] : memref<1x2x128xf32, #tpu.memory_space<vmem>>, vector<1x2x128xf32>
    tpu.vector_store %arg5[%c0_12, %c0_13, %c0_14], %23 {strides = array<i32>} : memref<1x2x128xf32, #tpu.memory_space<vmem>>, vector<1x2x128xf32>,
    return
  }
  func.func @transform_0(%arg0: i32) -> (i32, i32) {
    %c0_i32 = arith.constant 0 : i32
    %c0_i32_0 = arith.constant 0 : i32
    return %arg0, %c0_i32 : i32, i32
  }
  func.func @transform_1(%arg0: i32) -> (i32, i32) {
    %c0_i32 = arith.constant 0 : i32
    %c0_i32_0 = arith.constant 0 : i32
    %c0_i32_1 = arith.constant 0 : i32
    return %c0_i32, %c0_i32_0 : i32, i32
  }
  func.func @transform_2(%arg0: i32) -> (i32, i32) {
    %c0_i32 = arith.constant 0 : i32
    %c0_i32_0 = arith.constant 0 : i32
    %c0_i32_1 = arith.constant 0 : i32
    return %c0_i32, %c0_i32_0 : i32, i32
  }
  func.func @transform_3(%arg0: i32) -> (i32, i32) {
    %c0_i32 = arith.constant 0 : i32
    %c0_i32_0 = arith.constant 0 : i32
    return %arg0, %c0_i32 : i32, i32
  }
  func.func @transform_4(%arg0: i32) -> (i32, i32, i32) {
    %c0_i32 = arith.constant 0 : i32
    %c0_i32_0 = arith.constant 0 : i32
    %c0_i32_1 = arith.constant 0 : i32
    return %arg0, %c0_i32, %c0_i32_0 : i32, i32, i32
  }
}

module attributes {stable_mosaic.version = 11 : i64} {
  func.func @_conv_act_stats_kernel(%arg0: i32, %arg1: memref<512x288xbf16, #tpu.memory_space<vmem>>, %arg2: memref<288x128xbf16, #tpu.memory_space<vmem>>, %arg3: memref<1x128xf32, #tpu.memory_space<vmem>>, %arg4: memref<512x128xf32, #tpu.memory_space<vmem>>, %arg5: memref<1x2x128xf32, #tpu.memory_space<vmem>>) attributes {dimension_semantics = [#tpu.dimension_semantics<parallel>], iteration_bounds = array<i64: 1>, scalar_prefetch = 0 : i64, scratch_operands = 0 : i64, tpu.core_type = #tpu.core_type<tc>, window_params = [{transform_indices = @transform_0, window_bounds = array<i64: 512, 288>}, {pipeline_mode = #tpu.pipeline_mode<synchronous>, transform_indices = @transform_1, window_bounds = array<i64: 288, 128>}, {pipeline_mode = #tpu.pipeline_mode<synchronous>, transform_indices = @transform_2, window_bounds = array<i64: 1, 128>}, {transform_indices = @transform_3, window_bounds = array<i64: 512, 128>}, {transform_indices = @transform_4, window_bounds = array<i64: 1, 2, 128>}]} {
    %c0 = arith.constant 0 : index
    %c0_0 = arith.constant 0 : index
    %0 = vector.load %arg1[%c0, %c0_0] : memref<512x288xbf16, #tpu.memory_space<vmem>>, vector<512x288xbf16>
    %c0_1 = arith.constant 0 : index
    %c0_2 = arith.constant 0 : index
    %1 = vector.load %arg2[%c0_1, %c0_2] : memref<288x128xbf16, #tpu.memory_space<vmem>>, vector<288x128xbf16>
    %cst = arith.constant dense<0.000000e+00> : vector<512x128xf32>
    %2 = tpu.matmul %0, %1, %cst {dimension_numbers = #tpu.dot_dimension_numbers<[1], [0], [0], [1], [0, 0, 1, 1], [], []>} : vector<512x288xbf16>, vector<288x128xbf16>, vector<512x128xf32> -> vector<512x128xf32>
    %c0_3 = arith.constant 0 : index
    %c0_4 = arith.constant 0 : index
    %3 = vector.load %arg3[%c0_3, %c0_4] : memref<1x128xf32, #tpu.memory_space<vmem>>, vector<1x128xf32>
    %4 = vector.broadcast %3 : vector<1x128xf32> to vector<512x128xf32>
    %5 = arith.addf %2, %4 : vector<512x128xf32>
    %cst_5 = arith.constant 0.000000e+00 : f32
    %6 = vector.broadcast %cst_5 : f32 to vector<512x128xf32>
    %7 = arith.maximumf %5, %6 : vector<512x128xf32>
    %c0_6 = arith.constant 0 : index
    %c0_7 = arith.constant 0 : index
    %8 = vector.load %arg4[%c0_6, %c0_7] : memref<512x128xf32, #tpu.memory_space<vmem>>, vector<512x128xf32>
    tpu.vector_store %arg4[%c0_6, %c0_7], %7 {strides = array<i32>} : memref<512x128xf32, #tpu.memory_space<vmem>>, vector<512x128xf32>,
    %9 = tpu.iota {dimensions = array<i32: 0>} : vector<512x128xi32>
    %c512_i32 = arith.constant 512 : i32
    %10 = arith.muli %arg0, %c512_i32 : i32
    %11 = vector.broadcast %10 : i32 to vector<512x128xi32>
    %12 = arith.addi %9, %11 : vector<512x128xi32>
    %c512_i32_8 = arith.constant 512 : i32
    %13 = vector.broadcast %c512_i32_8 : i32 to vector<512x128xi32>
    %14 = arith.cmpi slt, %12, %13 : vector<512x128xi32>
    %cst_9 = arith.constant 0.000000e+00 : f32
    %15 = vector.broadcast %cst_9 : f32 to vector<512x128xf32>
    %16 = arith.select %14, %7, %15 : vector<512x128xi1>, vector<512x128xf32>
    %cst_10 = arith.constant dense<0.000000e+00> : vector<128xf32>
    %17 = vector.multi_reduction <add>, %16, %cst_10 [0] : vector<512x128xf32> to vector<128xf32>
    %18 = vector.shape_cast %17 : vector<128xf32> to vector<1x128xf32>
    %19 = arith.mulf %16, %16 : vector<512x128xf32>
    %cst_11 = arith.constant dense<0.000000e+00> : vector<128xf32>
    %20 = vector.multi_reduction <add>, %19, %cst_11 [0] : vector<512x128xf32> to vector<128xf32>
    %21 = vector.shape_cast %20 : vector<128xf32> to vector<1x128xf32>
    %22 = tpu.concatenate %18, %21 in 0 : vector<1x128xf32>, vector<1x128xf32> -> vector<2x128xf32>
    %23 = vector.shape_cast %22 : vector<2x128xf32> to vector<1x2x128xf32>
    %c0_12 = arith.constant 0 : index
    %c0_13 = arith.constant 0 : index
    %c0_14 = arith.constant 0 : index
    %24 = vector.load %arg5[%c0_12, %c0_13, %c0_14] : memref<1x2x128xf32, #tpu.memory_space<vmem>>, vector<1x2x128xf32>
    tpu.vector_store %arg5[%c0_12, %c0_13, %c0_14], %23 {strides = array<i32>} : memref<1x2x128xf32, #tpu.memory_space<vmem>>, vector<1x2x128xf32>,
    return
  }
  func.func @transform_0(%arg0: i32) -> (i32, i32) {
    %c0_i32 = arith.constant 0 : i32
    %c0_i32_0 = arith.constant 0 : i32
    return %arg0, %c0_i32 : i32, i32
  }
  func.func @transform_1(%arg0: i32) -> (i32, i32) {
    %c0_i32 = arith.constant 0 : i32
    %c0_i32_0 = arith.constant 0 : i32
    %c0_i32_1 = arith.constant 0 : i32
    return %c0_i32, %c0_i32_0 : i32, i32
  }
  func.func @transform_2(%arg0: i32) -> (i32, i32) {
    %c0_i32 = arith.constant 0 : i32
    %c0_i32_0 = arith.constant 0 : i32
    %c0_i32_1 = arith.constant 0 : i32
    return %c0_i32, %c0_i32_0 : i32, i32
  }
  func.func @transform_3(%arg0: i32) -> (i32, i32) {
    %c0_i32 = arith.constant 0 : i32
    %c0_i32_0 = arith.constant 0 : i32
    return %arg0, %c0_i32 : i32, i32
  }
  func.func @transform_4(%arg0: i32) -> (i32, i32, i32) {
    %c0_i32 = arith.constant 0 : i32
    %c0_i32_0 = arith.constant 0 : i32
    %c0_i32_1 = arith.constant 0 : i32
    return %arg0, %c0_i32, %c0_i32_0 : i32, i32, i32
  }
}

module attributes {stable_mosaic.version = 11 : i64} {
  func.func @_affine_kernel(%arg0: i32, %arg1: memref<512x128xf32, #tpu.memory_space<vmem>>, %arg2: memref<1x128xf32, #tpu.memory_space<vmem>>, %arg3: memref<1x128xf32, #tpu.memory_space<vmem>>, %arg4: memref<512x128xf32, #tpu.memory_space<vmem>>) attributes {dimension_semantics = [#tpu.dimension_semantics<parallel>], iteration_bounds = array<i64: 1>, scalar_prefetch = 0 : i64, scratch_operands = 0 : i64, tpu.core_type = #tpu.core_type<tc>, window_params = [{transform_indices = @transform_0, window_bounds = array<i64: 512, 128>}, {pipeline_mode = #tpu.pipeline_mode<synchronous>, transform_indices = @transform_1, window_bounds = array<i64: 1, 128>}, {pipeline_mode = #tpu.pipeline_mode<synchronous>, transform_indices = @transform_2, window_bounds = array<i64: 1, 128>}, {transform_indices = @transform_3, window_bounds = array<i64: 512, 128>}]} {
    %c0 = arith.constant 0 : index
    %c0_0 = arith.constant 0 : index
    %0 = vector.load %arg1[%c0, %c0_0] : memref<512x128xf32, #tpu.memory_space<vmem>>, vector<512x128xf32>
    %c0_1 = arith.constant 0 : index
    %c0_2 = arith.constant 0 : index
    %1 = vector.load %arg2[%c0_1, %c0_2] : memref<1x128xf32, #tpu.memory_space<vmem>>, vector<1x128xf32>
    %2 = vector.broadcast %1 : vector<1x128xf32> to vector<512x128xf32>
    %3 = arith.mulf %0, %2 : vector<512x128xf32>
    %c0_3 = arith.constant 0 : index
    %c0_4 = arith.constant 0 : index
    %4 = vector.load %arg3[%c0_3, %c0_4] : memref<1x128xf32, #tpu.memory_space<vmem>>, vector<1x128xf32>
    %5 = vector.broadcast %4 : vector<1x128xf32> to vector<512x128xf32>
    %6 = arith.addf %3, %5 : vector<512x128xf32>
    %c0_5 = arith.constant 0 : index
    %c0_6 = arith.constant 0 : index
    %7 = vector.load %arg4[%c0_5, %c0_6] : memref<512x128xf32, #tpu.memory_space<vmem>>, vector<512x128xf32>
    tpu.vector_store %arg4[%c0_5, %c0_6], %6 {strides = array<i32>} : memref<512x128xf32, #tpu.memory_space<vmem>>, vector<512x128xf32>,
    return
  }
  func.func @transform_0(%arg0: i32) -> (i32, i32) {
    %c0_i32 = arith.constant 0 : i32
    %c0_i32_0 = arith.constant 0 : i32
    return %arg0, %c0_i32 : i32, i32
  }
  func.func @transform_1(%arg0: i32) -> (i32, i32) {
    %c0_i32 = arith.constant 0 : i32
    %c0_i32_0 = arith.constant 0 : i32
    %c0_i32_1 = arith.constant 0 : i32
    return %c0_i32, %c0_i32_0 : i32, i32
  }
  func.func @transform_2(%arg0: i32) -> (i32, i32) {
    %c0_i32 = arith.constant 0 : i32
    %c0_i32_0 = arith.constant 0 : i32
    %c0_i32_1 = arith.constant 0 : i32
    return %c0_i32, %c0_i32_0 : i32, i32
  }
  func.func @transform_3(%arg0: i32) -> (i32, i32) {
    %c0_i32 = arith.constant 0 : i32
    %c0_i32_0 = arith.constant 0 : i32
    return %arg0, %c0_i32 : i32, i32
  }
}

</mosaic_0001>

<bundles_post_ra>
// kernel: conv_block_forward.3
= control target key start
LH: loop header
LB: loop body
LE: loop exit
PB: predicated region body
PF: predicated region fallthrough
CT: control target
= control target key end

     0   :  { %vm268_vm0 = vcmask 293888   ;;  %vm365_vm1 = vcmask 1041408   ;;  %vm1247_vm2 = vcmask 1040384   ;;  %s2092_s1 = inlined_call_operand.vmem [shape: bf16[36,128], index: 1, kind: input, shape index: {}]   ;;  %s2093_s0 = inlined_call_operand.vmem [shape: bf16[512,36], index: 0, kind: input, shape index: {}]   ;;  %s2094_s2 = inlined_call_operand.vmem [shape: f32[1,128], index: 2, kind: input, shape index: {}]   ;;  %s2095_s3 = inlined_call_operand.vmem [shape: f32[512,128], index: 3, kind: output, shape index: {0}]   ;;  %s2096_s4 = inlined_call_operand.vmem [shape: f32[1,2,128], index: 4, kind: output, shape index: {1}]  }
   0x1   :  { %v1439_v0 = vld [vmem:[%s2092_s1] sm:$0xff]   ;;  %v1440_v1 = vld [vmem:[%s2092_s1 + $0x8] sm:$0xff]   ;;  %v1441_v2 = vld [vmem:[%s2092_s1 + $0x10] ss:$0 sps:$4 sm:$0x33]  }
   0x2   :  { %1361 = vmatprep.subr.bf16.mxu0 %v1439_v0  ;;  %v1442_v3 = vld [vmem:[%s2093_s0] sm:$0xff]   ;;  %1431 = vmatprep.subr.bf16.mxu1 %v1439_v0  ;;  %v367_v4 = vsel %vm365_vm1, %v1441_v2, 0  ;;  %v1443_v5 = vld [vmem:[%s2093_s0 + $0x8] sm:$0xff]   ;;  %v1444_v6 = vld [vmem:[%s2093_s0 + $0x10] sm:$0xff]  }
   0x3   :  { %1362 = vmatpush3.bf16.msra.mxu0 %v1439_v0  ;;  %1434 = vmatpush3.bf16.msra.mxu1 %v1439_v0  ;;  %v1445_v7 = vld [vmem:[%s2093_s0 + $0x18] sm:$0xff]   ;;  %v1446_v8 = vld [vmem:[%s2093_s0 + $0x20] sm:$0xff]   ;;  %v1459_v10 = vld [vmem:[%s2093_s0 + $0x88] sm:$0xff]  }
   0x4   :  { %1363 = vmatprep.subr.bf16.mxu0 %v1440_v1  ;;  %1367 = vmatprep.mubr.msk.bf16.mxu0 %vm268_vm0, %v1442_v3  ;;  %v1458_v9 = vld [vmem:[%s2093_s0 + $0x80] sm:$0xff]   ;;  %v1460_v11 = vld [vmem:[%s2093_s0 + $0x90] sm:$0xff]   ;;  %v1447_v12 = vld [vmem:[%s2093_s0 + $0x28] sm:$0xff]  }
   0x5   :  { %1432 = vmatprep.subr.bf16.mxu1 %v1440_v1  ;;  %1399 = vmatprep.mubr.msk.bf16.mxu1 %vm268_vm0, %v1458_v9  ;;  %v1448_v13 = vld [vmem:[%s2093_s0 + $0x30] sm:$0xff]   ;;  %v1461_v14 = vld [vmem:[%s2093_s0 + $0x98] sm:$0xff]   ;;  %v1462_v15 = vld [vmem:[%s2093_s0 + $0xa0] sm:$0xff]  }
   0x6   :  { %v1449_v16 = vld [vmem:[%s2093_s0 + $0x38] sm:$0xff]   ;;  %v1463_v17 = vld [vmem:[%s2093_s0 + $0xa8] sm:$0xff]   ;;  %v1450_v18 = vld [vmem:[%s2093_s0 + $0x40] sm:$0xff]  }
   0x7   :  { %1364 = vmatpush3.bf16.msra.mxu0 %v1440_v1  ;;  %1435 = vmatpush3.bf16.msra.mxu1 %v1440_v1  ;;  %v1464_v19 = vld [vmem:[%s2093_s0 + $0xb0] sm:$0xff]   ;;  %v1451_v20 = vld [vmem:[%s2093_s0 + $0x48] sm:$0xff]   ;;  %v1465_v21 = vld [vmem:[%s2093_s0 + $0xb8] sm:$0xff]  }
   0x8   :  { %1437 = vmatprep.subr.msk.bf16.mxu0 %vm365_vm1, %v1441_v2  ;;  %1438 = vmatprep.subr.msk.bf16.mxu1 %vm365_vm1, %v1441_v2  ;;  %v1452_v22 = vld [vmem:[%s2093_s0 + $0x50] sm:$0xff]   ;;  %v1466_v23 = vld [vmem:[%s2093_s0 + $0xc0] sm:$0xff]   ;;  %v1453_v24 = vld [vmem:[%s2093_s0 + $0x58] sm:$0xff]  }
   0x9   :  { %v1467_v25 = vld [vmem:[%s2093_s0 + $0xc8] sm:$0xff]   ;;  %v1454_v26 = vld [vmem:[%s2093_s0 + $0x60] sm:$0xff]   ;;  %v1468_v27 = vld [vmem:[%s2093_s0 + $0xd0] sm:$0xff]  }
   0xa   :  { %v1455_v28 = vld [vmem:[%s2093_s0 + $0x68] sm:$0xff]   ;;  %v1469_v29 = vld [vmem:[%s2093_s0 + $0xd8] sm:$0xff]   ;;  %v1456_v30 = vld [vmem:[%s2093_s0 + $0x70] sm:$0xff]  }
   0xb   :  { %1366 = vmatpush3.bf16.msra.mxu0 %v367_v4  ;;  %1436 = vmatpush3.bf16.msra.mxu1 %v367_v4  ;;  %v1470_v31 = vld [vmem:[%s2093_s0 + $0xe0] sm:$0xff]   ;;  %v1457_v32 = vld [vmem:[%s2093_s0 + $0x78] sm:$0xff]   ;;  %v1471_v33 = vld [vmem:[%s2093_s0 + $0xe8] sm:$0xff]  }
   0xc   :  { %v1472_v34 = vld [vmem:[%s2093_s0 + $0xf0] sm:$0xff]   ;;  %v1473_v35 = vld [vmem:[%s2093_s0 + $0xf8] sm:$0xff]   ;;  %v1639_v36 = vld [vmem:[%s2094_s2] ss:$0 sm:$0xff] }
   0xe   :  { %1368 = vmatmul.mubr.msk.bf16.vlgmr.msra.gmra.mrb[0].mxu0 %vm268_vm0, %v1443_v5  ;;  %1400 = vmatmul.mubr.msk.bf16.vlgmr.msra.gmra.mrb[0].mxu1 %vm268_vm0, %v1459_v10 }
   0xf   :  { %1371 = vmatprep.mubr.msk.bf16.mxu0 %vm268_vm0, %v1444_v6  ;;  %1403 = vmatprep.mubr.msk.bf16.mxu1 %vm268_vm0, %v1460_v11 }
  0x16   :  { %1372 = vmatmul.mubr.msk.bf16.gmra.mrb[4].mxu0 %vm268_vm0, %v1445_v7  ;;  %1404 = vmatmul.mubr.msk.bf16.gmra.mrb[4].mxu1 %vm268_vm0, %v1461_v14 }
  0x17   :  { %1375 = vmatprep.mubr.msk.bf16.mxu0 %vm268_vm0, %v1446_v8  ;;  %1407 = vmatprep.mubr.msk.bf16.mxu1 %vm268_vm0, %v1462_v15 }
  0x1e   :  { %1376 = vmatmul.mubr.msk.bf16.gmra.mrb[8].mxu0 %vm268_vm0, %v1447_v12  ;;  %1408 = vmatmul.mubr.msk.bf16.gmra.mrb[8].mxu1 %vm268_vm0, %v1463_v17 }
  0x1f   :  { %1379 = vmatprep.mubr.msk.bf16.mxu0 %vm268_vm0, %v1448_v13  ;;  %1411 = vmatprep.mubr.msk.bf16.mxu1 %vm268_vm0, %v1464_v19 }
  0x26   :  { %1380 = vmatmul.mubr.msk.bf16.gmra.mrb[12].mxu0 %vm268_vm0, %v1449_v16  ;;  %1412 = vmatmul.mubr.msk.bf16.gmra.mrb[12].mxu1 %vm268_vm0, %v1465_v21 }
  0x27   :  { %1383 = vmatprep.mubr.msk.bf16.mxu0 %vm268_vm0, %v1450_v18  ;;  %1415 = vmatprep.mubr.msk.bf16.mxu1 %vm268_vm0, %v1466_v23 }
  0x2e   :  { %1384 = vmatmul.mubr.msk.bf16.gmra.mrb[16].mxu0 %vm268_vm0, %v1451_v20  ;;  %1416 = vmatmul.mubr.msk.bf16.gmra.mrb[16].mxu1 %vm268_vm0, %v1467_v25 }
  0x2f   :  { %1387 = vmatprep.mubr.msk.bf16.mxu0 %vm268_vm0, %v1452_v22  ;;  %1419 = vmatprep.mubr.msk.bf16.mxu1 %vm268_vm0, %v1468_v27 }
  0x36   :  { %1388 = vmatmul.mubr.msk.bf16.gmra.mrb[20].mxu0 %vm268_vm0, %v1453_v24  ;;  %1420 = vmatmul.mubr.msk.bf16.gmra.mrb[20].mxu1 %vm268_vm0, %v1469_v29 }
  0x37   :  { %1391 = vmatprep.mubr.msk.bf16.mxu0 %vm268_vm0, %v1454_v26  ;;  %1423 = vmatprep.mubr.msk.bf16.mxu1 %vm268_vm0, %v1470_v31 }
  0x3e   :  { %1392 = vmatmul.mubr.msk.bf16.gmra.mrb[24].mxu0 %vm268_vm0, %v1455_v28  ;;  %1424 = vmatmul.mubr.msk.bf16.gmra.mrb[24].mxu1 %vm268_vm0, %v1471_v33 }
  0x3f   :  { %1395 = vmatprep.mubr.msk.bf16.mxu0 %vm268_vm0, %v1456_v30  ;;  %1427 = vmatprep.mubr.msk.bf16.mxu1 %vm268_vm0, %v1472_v34 }
  0x46   :  { %1396 = vmatmul.mubr.msk.bf16.gmra.mrb[28].mxu0 %vm268_vm0, %v1457_v32  ;;  %1428 = vmatmul.mubr.msk.bf16.gmra.mrb[28].mxu1 %vm268_vm0, %v1473_v35 }
  0xe1   :  { %v1369_v37 = vpop.f32.mrb[0].mxu0  ;;  %v1401_v53 = vpop.f32.mrb[0].mxu1 }
  0xe2   :  { %v412_v38 = vadd.f32 %v1369_v37, %v1639_v36  ;;  %v403_v39 = vpop.f32.mrb[1].mxu0  ;;  %v540_v58 = vadd.f32 %v1401_v53, %v1639_v36  ;;  %v531_v59 = vpop.f32.mrb[1].mxu1 }
  0xe3   :  { %v404_v40 = vadd.f32 %v1639_v36, %v403_v39  ;;  %v1370_v41 = vpop.f32.mrb[2].mxu0  ;;  %v532_v0 = vadd.f32 %v1639_v36, %v531_v59  ;;  %v1402_v1 = vpop.f32.mrb[2].mxu1 }
  0xe4   :  { %v660_v42 = vmax.f32 %v412_v38, 0.0  ;;  %v415_v43 = vadd.f32 %v1370_v41, %v1639_v36  ;;  %v406_v44 = vpop.f32.mrb[3].mxu0  ;;  %v1662_v5 = vmax.f32 %v540_v58, 0.0  ;;  %v543_v6 = vadd.f32 %v1402_v1, %v1639_v36  ;;  %v534_v7 = vpop.f32.mrb[3].mxu1 }
  0xe5   :  { %v658_v45 = vmax.f32 %v404_v40, 0.0  ;;  %v407_v46 = vadd.f32 %v1639_v36, %v406_v44  ;;  %v1673_v13 = vmax.f32 %v532_v0, 0.0  ;;  %v535_v19 = vadd.f32 %v1639_v36, %v534_v7 }
  0xe6   :  { %724 = vst [vmem:[%s2095_s3 + $0x10] sm:$0xff] %v660_v42  ;;  %v661_v47 = vmax.f32 %v415_v43, 0.0  ;;  %v1116_v54 = vmul.f32 %v660_v42, %v660_v42  ;;  %756 = vst [vmem:[%s2095_s3 + $0x110] sm:$0xff] %v1662_v5  ;;  %v1685_v18 = vmax.f32 %v543_v6, 0.0 }
  0xe7   :  { %722 = vst [vmem:[%s2095_s3] sm:$0xff] %v658_v45  ;;  %v659_v48 = vmax.f32 %v407_v46, 0.0  ;;  %v1114_v49 = vmul.f32 %v658_v45, %v658_v45  ;;  %754 = vst [vmem:[%s2095_s3 + $0x100] sm:$0xff] %v1673_v13  ;;  %v1696_v28 = vmax.f32 %v535_v19, 0.0 }
  0xe8   :  { %725 = vst [vmem:[%s2095_s3 + $0x18] sm:$0xff] %v661_v47  ;;  %v1117_v55 = vmul.f32 %v661_v47, %v661_v47  ;;  %757 = vst [vmem:[%s2095_s3 + $0x118] sm:$0xff] %v1685_v18 }
  0xe9   :  { %723 = vst [vmem:[%s2095_s3 + $0x8] sm:$0xff] %v659_v48  ;;  %v1045_v50 = vadd.f32 %v659_v48, %v658_v45  ;;  %v1115_v51 = vmul.f32 %v659_v48, %v659_v48  ;;  %v1373_v52 = vpop.f32.mrb[4].mxu0  ;;  %v1405_v24 = vpop.f32.mrb[4].mxu1  ;;  %755 = vst [vmem:[%s2095_s3 + $0x108] sm:$0xff] %v1696_v28 }
  0xea   :  { %v428_v56 = vadd.f32 %v1373_v52, %v1639_v36  ;;  %v419_v57 = vpop.f32.mrb[5].mxu0  ;;  %v556_v29 = vadd.f32 %v1405_v24, %v1639_v36  ;;  %v547_v30 = vpop.f32.mrb[5].mxu1 }
  0xeb   :  { %v1046_v60 = vadd.f32 %v1045_v50, %v660_v42  ;;  %v1178_v61 = vadd.f32 %v1115_v51, %v1114_v49  ;;  %v420_v62 = vadd.f32 %v1639_v36, %v419_v57  ;;  %v1374_v63 = vpop.f32.mrb[6].mxu0  ;;  %v548_v35 = vadd.f32 %v1639_v36, %v547_v30  ;;  %v1406_v37 = vpop.f32.mrb[6].mxu1 }
  0xec   :  { %v664_v2 = vmax.f32 %v428_v56, 0.0  ;;  %v431_v3 = vadd.f32 %v1374_v63, %v1639_v36  ;;  %v422_v4 = vpop.f32.mrb[7].mxu0  ;;  %v1706_v42 = vmax.f32 %v556_v29, 0.0  ;;  %v550_v43 = vpop.f32.mrb[7].mxu1 }
  0xed   :  { %v1179_v8 = vadd.f32 %v1178_v61, %v1116_v54  ;;  %v662_v9 = vmax.f32 %v420_v62, 0.0  ;;  %v1047_v10 = vadd.f32 %v1046_v60, %v661_v47  ;;  %v423_v11 = vadd.f32 %v1639_v36, %v422_v4 }
  0xee   :  { %728 = vst [vmem:[%s2095_s3 + $0x30] sm:$0xff] %v664_v2  ;;  %v665_v12 = vmax.f32 %v431_v3, 0.0  ;;  %v1120_v25 = vmul.f32 %v664_v2, %v664_v2  ;;  %760 = vst [vmem:[%s2095_s3 + $0x130] sm:$0xff] %v1706_v42  ;;  %v1716_v49 = vmax.f32 %v548_v35, 0.0  ;;  %v559_v54 = vadd.f32 %v1406_v37, %v1639_v36 }
  0xef   :  { %726 = vst [vmem:[%s2095_s3 + $0x20] sm:$0xff] %v662_v9  ;;  %v1048_v14 = vadd.f32 %v1047_v10, %v662_v9  ;;  %v1118_v15 = vmul.f32 %v662_v9, %v662_v9  ;;  %v1180_v16 = vadd.f32 %v1179_v8, %v1117_v55  ;;  %v663_v17 = vmax.f32 %v423_v11, 0.0 }
  0xf0   :  { %729 = vst [vmem:[%s2095_s3 + $0x38] sm:$0xff] %v665_v12  ;;  %v1121_v38 = vmul.f32 %v665_v12, %v665_v12  ;;  %758 = vst [vmem:[%s2095_s3 + $0x120] sm:$0xff] %v1716_v49  ;;  %v551_v55 = vadd.f32 %v1639_v36, %v550_v43  ;;  %v1734_v0 = vmax.f32 %v559_v54, 0.0 }
  0xf1   :  { %v1181_v20 = vadd.f32 %v1180_v16, %v1118_v15  ;;  %727 = vst [vmem:[%s2095_s3 + $0x28] sm:$0xff] %v663_v17  ;;  %v1049_v21 = vadd.f32 %v1048_v14, %v663_v17  ;;  %v1119_v22 = vmul.f32 %v663_v17, %v663_v17  ;;  %v1377_v23 = vpop.f32.mrb[8].mxu0  ;;  %v1409_v61 = vpop.f32.mrb[8].mxu1 }
  0xf2   :  { %v444_v26 = vadd.f32 %v1377_v23, %v1639_v36  ;;  %v435_v27 = vpop.f32.mrb[9].mxu0  ;;  %v1736_v1 = vmax.f32 %v551_v55, 0.0  ;;  %v563_v3 = vpop.f32.mrb[9].mxu1  ;;  %761 = vst [vmem:[%s2095_s3 + $0x138] sm:$0xff] %v1734_v0 }
  0xf3   :  { %v1050_v31 = vadd.f32 %v1049_v21, %v664_v2  ;;  %v1182_v32 = vadd.f32 %v1181_v20, %v1119_v22  ;;  %v436_v33 = vadd.f32 %v1639_v36, %v435_v27  ;;  %v1378_v34 = vpop.f32.mrb[10].mxu0  ;;  %v572_v2 = vadd.f32 %v1409_v61, %v1639_v36  ;;  %v1410_v10 = vpop.f32.mrb[10].mxu1 }
  0xf4   :  { %v668_v39 = vmax.f32 %v444_v26, 0.0  ;;  %v447_v40 = vadd.f32 %v1378_v34, %v1639_v36  ;;  %v438_v41 = vpop.f32.mrb[11].mxu0  ;;  %v564_v9 = vadd.f32 %v1639_v36, %v563_v3  ;;  %759 = vst [vmem:[%s2095_s3 + $0x128] sm:$0xff] %v1736_v1  ;;  %v566_v16 = vpop.f32.mrb[11].mxu1  ;;  %v575_v30 = vadd.f32 %v1410_v10, %v1639_v36 }
  0xf5   :  { %v1183_v44 = vadd.f32 %v1182_v32, %v1120_v25  ;;  %v666_v45 = vmax.f32 %v436_v33, 0.0  ;;  %v1051_v46 = vadd.f32 %v1050_v31, %v665_v12  ;;  %v439_v47 = vadd.f32 %v1639_v36, %v438_v41 }
  0xf6   :  { %732 = vst [vmem:[%s2095_s3 + $0x50] sm:$0xff] %v668_v39  ;;  %v669_v48 = vmax.f32 %v447_v40, 0.0  ;;  %v1124_v56 = vmul.f32 %v668_v39, %v668_v39  ;;  %v1754_v23 = vmax.f32 %v572_v2, 0.0  ;;  %v1756_v24 = vmax.f32 %v564_v9, 0.0 }
  0xf7   :  { %730 = vst [vmem:[%s2095_s3 + $0x40] sm:$0xff] %v666_v45  ;;  %v1052_v50 = vadd.f32 %v1051_v46, %v666_v45  ;;  %v1122_v51 = vmul.f32 %v666_v45, %v666_v45  ;;  %v1184_v52 = vadd.f32 %v1183_v44, %v1121_v38  ;;  %v667_v53 = vmax.f32 %v439_v47, 0.0 }
  0xf8   :  { %733 = vst [vmem:[%s2095_s3 + $0x58] sm:$0xff] %v669_v48  ;;  %v1125_v11 = vmul.f32 %v669_v48, %v669_v48  ;;  %764 = vst [vmem:[%s2095_s3 + $0x150] sm:$0xff] %v1754_v23  ;;  %v567_v35 = vadd.f32 %v1639_v36, %v566_v16  ;;  %v1778_v41 = vmax.f32 %v575_v30, 0.0 }
  0xf9   :  { %v1185_v57 = vadd.f32 %v1184_v52, %v1122_v51  ;;  %731 = vst [vmem:[%s2095_s3 + $0x48] sm:$0xff] %v667_v53  ;;  %v1053_v58 = vadd.f32 %v1052_v50, %v667_v53  ;;  %v1123_v59 = vmul.f32 %v667_v53, %v667_v53  ;;  %v1381_v60 = vpop.f32.mrb[12].mxu0  ;;  %762 = vst [vmem:[%s2095_s3 + $0x140] sm:$0xff] %v1756_v24  ;;  %v1413_v37 = vpop.f32.mrb[12].mxu1 }
  0xfa   :  { %v460_v62 = vadd.f32 %v1381_v60, %v1639_v36  ;;  %v451_v63 = vpop.f32.mrb[13].mxu0  ;;  %v588_v43 = vadd.f32 %v1413_v37, %v1639_v36  ;;  %v579_v44 = vpop.f32.mrb[13].mxu1  ;;  %v1782_v50 = vmax.f32 %v567_v35, 0.0  ;;  %765 = vst [vmem:[%s2095_s3 + $0x158] sm:$0xff] %v1778_v41 }
  0xfb   :  { %v1054_v4 = vadd.f32 %v1053_v58, %v668_v39  ;;  %v1186_v6 = vadd.f32 %v1185_v57, %v1123_v59  ;;  %v452_v7 = vadd.f32 %v1639_v36, %v451_v63  ;;  %v1382_v8 = vpop.f32.mrb[14].mxu0  ;;  %v1414_v51 = vpop.f32.mrb[14].mxu1 }
  0xfc   :  { %v672_v12 = vmax.f32 %v460_v62, 0.0  ;;  %v463_v14 = vadd.f32 %v1382_v8, %v1639_v36  ;;  %v454_v15 = vpop.f32.mrb[15].mxu0  ;;  %v582_v57 = vpop.f32.mrb[15].mxu1  ;;  %763 = vst [vmem:[%s2095_s3 + $0x148] sm:$0xff] %v1782_v50 }
  0xfd   :  { %v1187_v17 = vadd.f32 %v1186_v6, %v1124_v56  ;;  %v670_v19 = vmax.f32 %v452_v7, 0.0  ;;  %v1055_v20 = vadd.f32 %v1054_v4, %v669_v48  ;;  %v455_v21 = vadd.f32 %v1639_v36, %v454_v15 }
  0xfe   :  { %736 = vst [vmem:[%s2095_s3 + $0x70] sm:$0xff] %v672_v12  ;;  %v673_v22 = vmax.f32 %v463_v14, 0.0  ;;  %v1128_v38 = vmul.f32 %v672_v12, %v672_v12  ;;  %v1789_v56 = vmax.f32 %v588_v43, 0.0  ;;  %v580_v6 = vadd.f32 %v1639_v36, %v579_v44 }
  0xff   :  { %734 = vst [vmem:[%s2095_s3 + $0x60] sm:$0xff] %v670_v19  ;;  %v1056_v25 = vadd.f32 %v1055_v20, %v670_v19  ;;  %v1126_v26 = vmul.f32 %v670_v19, %v670_v19  ;;  %v1188_v27 = vadd.f32 %v1187_v17, %v1125_v11  ;;  %v671_v29 = vmax.f32 %v455_v21, 0.0 }
 0x100   :  { %737 = vst [vmem:[%s2095_s3 + $0x78] sm:$0xff] %v673_v22  ;;  %v1129_v52 = vmul.f32 %v673_v22, %v673_v22  ;;  %768 = vst [vmem:[%s2095_s3 + $0x170] sm:$0xff] %v1789_v56  ;;  %v591_v7 = vadd.f32 %v1414_v51, %v1639_v36  ;;  %v583_v8 = vadd.f32 %v1639_v36, %v582_v57  ;;  %v1816_v19 = vmax.f32 %v580_v6, 0.0 }
 0x101   :  { %v1189_v31 = vadd.f32 %v1188_v27, %v1126_v26  ;;  %735 = vst [vmem:[%s2095_s3 + $0x68] sm:$0xff] %v671_v29  ;;  %v1057_v32 = vadd.f32 %v1056_v25, %v671_v29  ;;  %v1127_v33 = vmul.f32 %v671_v29, %v671_v29  ;;  %v1385_v34 = vpop.f32.mrb[16].mxu0  ;;  %v1417_v15 = vpop.f32.mrb[16].mxu1 }
 0x102   :  { %v476_v39 = vadd.f32 %v1385_v34, %v1639_v36  ;;  %v467_v40 = vpop.f32.mrb[17].mxu0  ;;  %v1818_v20 = vmax.f32 %v591_v7, 0.0  ;;  %v1820_v21 = vmax.f32 %v583_v8, 0.0  ;;  %v604_v30 = vadd.f32 %v1417_v15, %v1639_v36  ;;  %766 = vst [vmem:[%s2095_s3 + $0x160] sm:$0xff] %v1816_v19 }
 0x103   :  { %v1058_v45 = vadd.f32 %v1057_v32, %v672_v12  ;;  %v1190_v46 = vadd.f32 %v1189_v31, %v1127_v33  ;;  %v468_v47 = vadd.f32 %v1639_v36, %v467_v40  ;;  %v1386_v48 = vpop.f32.mrb[18].mxu0 }
 0x104   :  { %v676_v53 = vmax.f32 %v476_v39, 0.0  ;;  %v479_v54 = vadd.f32 %v1386_v48, %v1639_v36  ;;  %v470_v55 = vpop.f32.mrb[19].mxu0  ;;  %769 = vst [vmem:[%s2095_s3 + $0x178] sm:$0xff] %v1818_v20  ;;  %767 = vst [vmem:[%s2095_s3 + $0x168] sm:$0xff] %v1820_v21 }
 0x105   :  { %v1191_v58 = vadd.f32 %v1190_v46, %v1128_v38  ;;  %v674_v59 = vmax.f32 %v468_v47, 0.0  ;;  %v1059_v60 = vadd.f32 %v1058_v45, %v673_v22  ;;  %v471_v61 = vadd.f32 %v1639_v36, %v470_v55  ;;  %v595_v22 = vpop.f32.mrb[17].mxu1 }
 0x106   :  { %740 = vst [vmem:[%s2095_s3 + $0x90] sm:$0xff] %v676_v53  ;;  %v677_v62 = vmax.f32 %v479_v54, 0.0  ;;  %v1132_v9 = vmul.f32 %v676_v53, %v676_v53  ;;  %v1418_v31 = vpop.f32.mrb[18].mxu1  ;;  %v1841_v45 = vmax.f32 %v604_v30, 0.0 }
 0x107   :  { %738 = vst [vmem:[%s2095_s3 + $0x80] sm:$0xff] %v674_v59  ;;  %v1060_v63 = vadd.f32 %v1059_v60, %v674_v59  ;;  %v1130_v2 = vmul.f32 %v674_v59, %v674_v59  ;;  %v1192_v3 = vadd.f32 %v1191_v58, %v1129_v52  ;;  %v675_v4 = vmax.f32 %v471_v61, 0.0  ;;  %v598_v37 = vpop.f32.mrb[19].mxu1 }
 0x108   :  { %741 = vst [vmem:[%s2095_s3 + $0x98] sm:$0xff] %v677_v62  ;;  %v1133_v32 = vmul.f32 %v677_v62, %v677_v62  ;;  %772 = vst [vmem:[%s2095_s3 + $0x190] sm:$0xff] %v1841_v45  ;;  %v607_v54 = vadd.f32 %v1418_v31, %v1639_v36  ;;  %v599_v60 = vadd.f32 %v1639_v36, %v598_v37 }
 0x109   :  { %v1193_v10 = vadd.f32 %v1192_v3, %v1130_v2  ;;  %739 = vst [vmem:[%s2095_s3 + $0x88] sm:$0xff] %v675_v4  ;;  %v1061_v11 = vadd.f32 %v1060_v63, %v675_v4  ;;  %v1131_v12 = vmul.f32 %v675_v4, %v675_v4  ;;  %v1389_v14 = vpop.f32.mrb[20].mxu0  ;;  %v1421_v61 = vpop.f32.mrb[20].mxu1 }
 0x10a   :  { %v492_v16 = vadd.f32 %v1389_v14, %v1639_v36  ;;  %v483_v17 = vpop.f32.mrb[21].mxu0  ;;  %v1862_v3 = vmax.f32 %v607_v54, 0.0  ;;  %v620_v4 = vadd.f32 %v1421_v61, %v1639_v36  ;;  %v611_v6 = vpop.f32.mrb[21].mxu1 }
 0x10b   :  { %v1062_v25 = vadd.f32 %v1061_v11, %v676_v53  ;;  %v1194_v26 = vadd.f32 %v1193_v10, %v1131_v12  ;;  %v484_v27 = vadd.f32 %v1639_v36, %v483_v17  ;;  %v1390_v29 = vpop.f32.mrb[22].mxu0  ;;  %v596_v53 = vadd.f32 %v1639_v36, %v595_v22  ;;  %v1422_v12 = vpop.f32.mrb[22].mxu1 }
 0x10c   :  { %v680_v33 = vmax.f32 %v492_v16, 0.0  ;;  %v495_v34 = vadd.f32 %v1390_v29, %v1639_v36  ;;  %v486_v35 = vpop.f32.mrb[23].mxu0  ;;  %v1866_v11 = vmax.f32 %v599_v60, 0.0  ;;  %773 = vst [vmem:[%s2095_s3 + $0x198] sm:$0xff] %v1862_v3  ;;  %v614_v22 = vpop.f32.mrb[23].mxu1  ;;  %v1885_v31 = vmax.f32 %v620_v4, 0.0 }
 0x10d   :  { %v1195_v38 = vadd.f32 %v1194_v26, %v1132_v9  ;;  %v678_v39 = vmax.f32 %v484_v27, 0.0  ;;  %v1063_v40 = vadd.f32 %v1062_v25, %v677_v62  ;;  %v487_v43 = vadd.f32 %v1639_v36, %v486_v35 }
 0x10e   :  { %744 = vst [vmem:[%s2095_s3 + $0xb0] sm:$0xff] %v680_v33  ;;  %v681_v44 = vmax.f32 %v495_v34, 0.0  ;;  %v1136_v52 = vmul.f32 %v680_v33, %v680_v33  ;;  %v1860_v2 = vmax.f32 %v596_v53, 0.0  ;;  %771 = vst [vmem:[%s2095_s3 + $0x188] sm:$0xff] %v1866_v11 }
 0x10f   :  { %742 = vst [vmem:[%s2095_s3 + $0xa0] sm:$0xff] %v678_v39  ;;  %v1064_v46 = vadd.f32 %v1063_v40, %v678_v39  ;;  %v1134_v47 = vmul.f32 %v678_v39, %v678_v39  ;;  %v1196_v48 = vadd.f32 %v1195_v38, %v1133_v32  ;;  %v679_v51 = vmax.f32 %v487_v43, 0.0  ;;  %776 = vst [vmem:[%s2095_s3 + $0x1b0] sm:$0xff] %v1885_v31 }
 0x110   :  { %745 = vst [vmem:[%s2095_s3 + $0xb8] sm:$0xff] %v681_v44  ;;  %v1137_v14 = vmul.f32 %v681_v44, %v681_v44  ;;  %770 = vst [vmem:[%s2095_s3 + $0x180] sm:$0xff] %v1860_v2  ;;  %v612_v38 = vadd.f32 %v1639_v36, %v611_v6  ;;  %v623_v39 = vadd.f32 %v1422_v12, %v1639_v36 }
 0x111   :  { %v1197_v55 = vadd.f32 %v1196_v48, %v1134_v47  ;;  %743 = vst [vmem:[%s2095_s3 + $0xa8] sm:$0xff] %v679_v51  ;;  %v1065_v57 = vadd.f32 %v1064_v46, %v679_v51  ;;  %v1135_v58 = vmul.f32 %v679_v51, %v679_v51  ;;  %v1393_v59 = vpop.f32.mrb[24].mxu0  ;;  %v615_v47 = vadd.f32 %v1639_v36, %v614_v22  ;;  %v1425_v48 = vpop.f32.mrb[24].mxu1 }
 0x112   :  { %v508_v62 = vadd.f32 %v1393_v59, %v1639_v36  ;;  %v499_v63 = vpop.f32.mrb[25].mxu0  ;;  %v1904_v53 = vmax.f32 %v612_v38, 0.0  ;;  %v1906_v54 = vmax.f32 %v623_v39, 0.0 }
 0x113   :  { %v1066_v7 = vadd.f32 %v1065_v57, %v680_v33  ;;  %v1198_v8 = vadd.f32 %v1197_v55, %v1135_v58  ;;  %v500_v9 = vadd.f32 %v1639_v36, %v499_v63  ;;  %v1394_v10 = vpop.f32.mrb[26].mxu0  ;;  %v636_v55 = vadd.f32 %v1425_v48, %v1639_v36  ;;  %v627_v57 = vpop.f32.mrb[25].mxu1 }
 0x114   :  { %v684_v15 = vmax.f32 %v508_v62, 0.0  ;;  %v511_v16 = vadd.f32 %v1394_v10, %v1639_v36  ;;  %v502_v17 = vpop.f32.mrb[27].mxu0  ;;  %v1910_v62 = vmax.f32 %v615_v47, 0.0  ;;  %v1426_v63 = vpop.f32.mrb[26].mxu1  ;;  %774 = vst [vmem:[%s2095_s3 + $0x1a0] sm:$0xff] %v1904_v53  ;;  %777 = vst [vmem:[%s2095_s3 + $0x1b8] sm:$0xff] %v1906_v54 }
 0x115   :  { %v1199_v25 = vadd.f32 %v1198_v8, %v1136_v52  ;;  %v682_v26 = vmax.f32 %v500_v9, 0.0  ;;  %v1067_v27 = vadd.f32 %v1066_v7, %v681_v44  ;;  %v503_v29 = vadd.f32 %v1639_v36, %v502_v17  ;;  %v630_v9 = vpop.f32.mrb[27].mxu1 }
 0x116   :  { %748 = vst [vmem:[%s2095_s3 + $0xd0] sm:$0xff] %v684_v15  ;;  %v685_v30 = vmax.f32 %v511_v16, 0.0  ;;  %v1140_v37 = vmul.f32 %v684_v15, %v684_v15  ;;  %775 = vst [vmem:[%s2095_s3 + $0x1a8] sm:$0xff] %v1910_v62  ;;  %v1929_v17 = vmax.f32 %v636_v55, 0.0  ;;  %v1146_v55 = vmul.f32 %v1673_v13, %v1673_v13 }
 0x117   :  { %746 = vst [vmem:[%s2095_s3 + $0xc0] sm:$0xff] %v682_v26  ;;  %v1068_v32 = vadd.f32 %v1067_v27, %v682_v26  ;;  %v1138_v33 = vmul.f32 %v682_v26, %v682_v26  ;;  %v1200_v34 = vadd.f32 %v1199_v25, %v1137_v14  ;;  %v683_v35 = vmax.f32 %v503_v29, 0.0 }
 0x118   :  { %749 = vst [vmem:[%s2095_s3 + $0xd8] sm:$0xff] %v685_v30  ;;  %v1141_v4 = vmul.f32 %v685_v30, %v685_v30  ;;  %780 = vst [vmem:[%s2095_s3 + $0x1d0] sm:$0xff] %v1929_v17  ;;  %v628_v29 = vadd.f32 %v1639_v36, %v627_v57 }
 0x119   :  { %v1201_v40 = vadd.f32 %v1200_v34, %v1138_v33  ;;  %747 = vst [vmem:[%s2095_s3 + $0xc8] sm:$0xff] %v683_v35  ;;  %v1069_v43 = vadd.f32 %v1068_v32, %v683_v35  ;;  %v1139_v44 = vmul.f32 %v683_v35, %v683_v35  ;;  %v1397_v46 = vpop.f32.mrb[28].mxu0  ;;  %v631_v35 = vadd.f32 %v1639_v36, %v630_v9 }
 0x11a   :  { %v524_v51 = vadd.f32 %v1397_v46, %v1639_v36  ;;  %v515_v52 = vpop.f32.mrb[29].mxu0  ;;  %v1947_v39 = vmax.f32 %v628_v29, 0.0 }
 0x11b   :  { %v1070_v58 = vadd.f32 %v1069_v43, %v684_v15  ;;  %v1202_v59 = vadd.f32 %v1201_v40, %v1139_v44  ;;  %v516_v60 = vadd.f32 %v1639_v36, %v515_v52  ;;  %v1398_v61 = vpop.f32.mrb[30].mxu0  ;;  %v1952_v48 = vmax.f32 %v631_v35, 0.0 }
 0x11c   :  { %v688_v6 = vmax.f32 %v524_v51, 0.0  ;;  %v527_v7 = vadd.f32 %v1398_v61, %v1639_v36  ;;  %v518_v8 = vpop.f32.mrb[31].mxu0  ;;  %778 = vst [vmem:[%s2095_s3 + $0x1c0] sm:$0xff] %v1947_v39 }
 0x11d   :  { %v1203_v10 = vadd.f32 %v1202_v59, %v1140_v37  ;;  %v686_v12 = vmax.f32 %v516_v60, 0.0  ;;  %v1071_v14 = vadd.f32 %v1070_v58, %v685_v30  ;;  %v519_v15 = vadd.f32 %v1639_v36, %v518_v8  ;;  %v1429_v37 = vpop.f32.mrb[28].mxu1  ;;  %779 = vst [vmem:[%s2095_s3 + $0x1c8] sm:$0xff] %v1952_v48 }
 0x11e   :  { %752 = vst [vmem:[%s2095_s3 + $0xf0] sm:$0xff] %v688_v6  ;;  %v689_v16 = vmax.f32 %v527_v7, 0.0  ;;  %v639_v30 = vadd.f32 %v1426_v63, %v1639_v36  ;;  %v1144_v38 = vmul.f32 %v688_v6, %v688_v6  ;;  %v652_v43 = vadd.f32 %v1429_v37, %v1639_v36  ;;  %v643_v44 = vpop.f32.mrb[29].mxu1 }
 0x11f   :  { %750 = vst [vmem:[%s2095_s3 + $0xe0] sm:$0xff] %v686_v12  ;;  %v1072_v22 = vadd.f32 %v1071_v14, %v686_v12  ;;  %v1142_v25 = vmul.f32 %v686_v12, %v686_v12  ;;  %v1204_v26 = vadd.f32 %v1203_v10, %v1141_v4  ;;  %v687_v27 = vmax.f32 %v519_v15, 0.0  ;;  %v1430_v52 = vpop.f32.mrb[30].mxu1 }
 0x120   :  { %753 = vst [vmem:[%s2095_s3 + $0xf8] sm:$0xff] %v689_v16  ;;  %v1949_v40 = vmax.f32 %v639_v30, 0.0  ;;  %v644_v51 = vadd.f32 %v1639_v36, %v643_v44  ;;  %v1965_v57 = vmax.f32 %v652_v43, 0.0  ;;  %v655_v58 = vadd.f32 %v1430_v52, %v1639_v36  ;;  %v646_v59 = vpop.f32.mrb[31].mxu1 }
 0x121   :  { %v1205_v32 = vadd.f32 %v1204_v26, %v1142_v25  ;;  %751 = vst [vmem:[%s2095_s3 + $0xe8] sm:$0xff] %v687_v27  ;;  %v1073_v33 = vadd.f32 %v1072_v22, %v687_v27  ;;  %v1143_v34 = vmul.f32 %v687_v27, %v687_v27  ;;  %v1145_v60 = vmul.f32 %v689_v16, %v689_v16 }
 0x122   :  { %781 = vst [vmem:[%s2095_s3 + $0x1d8] sm:$0xff] %v1949_v40  ;;  %v1972_v4 = vmax.f32 %v644_v51, 0.0  ;;  %784 = vst [vmem:[%s2095_s3 + $0x1f0] sm:$0xff] %v1965_v57  ;;  %v647_v7 = vadd.f32 %v1639_v36, %v646_v59  ;;  %v1147_v36 = vmul.f32 %v1696_v28, %v1696_v28  ;;  %v1149_v22 = vmul.f32 %v1685_v18, %v1685_v18 }
 0x123   :  { %v1074_v46 = vadd.f32 %v1073_v33, %v688_v6  ;;  %v1206_v47 = vadd.f32 %v1205_v32, %v1143_v34  ;;  %v1978_v6 = vmax.f32 %v655_v58, 0.0  ;;  %v1151_v33 = vmul.f32 %v1736_v1, %v1736_v1 }
 0x124   :  { %782 = vst [vmem:[%s2095_s3 + $0x1e0] sm:$0xff] %v1972_v4  ;;  %v1990_v10 = vmax.f32 %v647_v7, 0.0 }
 0x125   :  { %v1207_v61 = vadd.f32 %v1206_v47, %v1144_v38  ;;  %v1075_v63 = vadd.f32 %v1074_v46, %v689_v16  ;;  %785 = vst [vmem:[%s2095_s3 + $0x1f8] sm:$0xff] %v1978_v6  ;;  %v1155_v47 = vmul.f32 %v1782_v50, %v1782_v50 }
 0x126   :  { %783 = vst [vmem:[%s2095_s3 + $0x1e8] sm:$0xff] %v1990_v10 }
 0x127   :  { %v1076_v8 = vadd.f32 %v1075_v63, %v1673_v13  ;;  %v1208_v9 = vadd.f32 %v1207_v61, %v1145_v60  ;;  %v1148_v13 = vmul.f32 %v1662_v5, %v1662_v5  ;;  %v1159_v63 = vmul.f32 %v1820_v21, %v1820_v21 }
 0x129   :  { %v1209_v12 = vadd.f32 %v1208_v9, %v1146_v55  ;;  %v1077_v14 = vadd.f32 %v1076_v8, %v1696_v28  ;;  %v1150_v28 = vmul.f32 %v1716_v49, %v1716_v49 }
 0x12b   :  { %v1078_v15 = vadd.f32 %v1077_v14, %v1662_v5  ;;  %v1210_v16 = vadd.f32 %v1209_v12, %v1147_v36  ;;  %v1152_v5 = vmul.f32 %v1706_v42, %v1706_v42 }
 0x12d   :  { %v1211_v25 = vadd.f32 %v1210_v16, %v1148_v13  ;;  %v1079_v26 = vadd.f32 %v1078_v15, %v1685_v18  ;;  %v1153_v18 = vmul.f32 %v1734_v0, %v1734_v0  ;;  %v1163_v15 = vmul.f32 %v1866_v11, %v1866_v11 }
 0x12f   :  { %v1080_v27 = vadd.f32 %v1079_v26, %v1716_v49  ;;  %v1212_v29 = vadd.f32 %v1211_v25, %v1149_v22  ;;  %v1154_v49 = vmul.f32 %v1756_v24, %v1756_v24 }
 0x131   :  { %v1213_v30 = vadd.f32 %v1212_v29, %v1150_v28  ;;  %v1081_v32 = vadd.f32 %v1080_v27, %v1736_v1 }
 0x133   :  { %v1082_v34 = vadd.f32 %v1081_v32, %v1706_v42  ;;  %v1214_v35 = vadd.f32 %v1213_v30, %v1151_v33  ;;  %v1156_v42 = vmul.f32 %v1754_v23, %v1754_v23  ;;  %v1167_v30 = vmul.f32 %v1910_v62, %v1910_v62 }
 0x135   :  { %v1215_v37 = vadd.f32 %v1214_v35, %v1152_v5  ;;  %v1083_v38 = vadd.f32 %v1082_v34, %v1734_v0  ;;  %v1157_v0 = vmul.f32 %v1778_v41, %v1778_v41 }
 0x137   :  { %v1084_v43 = vadd.f32 %v1083_v38, %v1756_v24  ;;  %v1216_v44 = vadd.f32 %v1215_v37, %v1153_v18  ;;  %v1158_v24 = vmul.f32 %v1816_v19, %v1816_v19  ;;  %v1171_v38 = vmul.f32 %v1952_v48, %v1952_v48 }
 0x139   :  { %v1217_v46 = vadd.f32 %v1216_v44, %v1154_v49  ;;  %v1085_v1 = vadd.f32 %v1084_v43, %v1782_v50 }
 0x13b   :  { %v1086_v51 = vadd.f32 %v1085_v1, %v1754_v23  ;;  %v1218_v52 = vadd.f32 %v1217_v46, %v1155_v47  ;;  %v1160_v23 = vmul.f32 %v1789_v56, %v1789_v56 }
 0x13d   :  { %v1219_v55 = vadd.f32 %v1218_v52, %v1156_v42  ;;  %v1087_v58 = vadd.f32 %v1086_v51, %v1778_v41  ;;  %v1161_v41 = vmul.f32 %v1818_v20, %v1818_v20  ;;  %v1175_v51 = vmul.f32 %v1990_v10, %v1990_v10 }
 0x13f   :  { %v1088_v59 = vadd.f32 %v1087_v58, %v1816_v19  ;;  %v1220_v60 = vadd.f32 %v1219_v55, %v1157_v0  ;;  %v1162_v19 = vmul.f32 %v1860_v2, %v1860_v2 }
 0x141   :  { %v1221_v61 = vadd.f32 %v1220_v60, %v1158_v24  ;;  %v1089_v50 = vadd.f32 %v1088_v59, %v1820_v21 }
 0x143   :  { %v1090_v7 = vadd.f32 %v1089_v50, %v1789_v56  ;;  %v1222_v8 = vadd.f32 %v1221_v61, %v1159_v63  ;;  %v1164_v56 = vmul.f32 %v1841_v45, %v1841_v45 }
 0x145   :  { %v1223_v9 = vadd.f32 %v1222_v8, %v1160_v23  ;;  %v1091_v12 = vadd.f32 %v1090_v7, %v1818_v20  ;;  %v1165_v20 = vmul.f32 %v1862_v3, %v1862_v3 }
 0x147   :  { %v1092_v14 = vadd.f32 %v1091_v12, %v1860_v2  ;;  %v1224_v36 = vadd.f32 %v1223_v9, %v1161_v41  ;;  %v1166_v2 = vmul.f32 %v1904_v53, %v1904_v53 }
 0x149   :  { %v1225_v13 = vadd.f32 %v1224_v36, %v1162_v19  ;;  %v1093_v21 = vadd.f32 %v1092_v14, %v1866_v11 }
 0x14b   :  { %v1094_v16 = vadd.f32 %v1093_v21, %v1841_v45  ;;  %v1226_v22 = vadd.f32 %v1225_v13, %v1163_v15  ;;  %v1168_v45 = vmul.f32 %v1885_v31, %v1885_v31 }
 0x14d   :  { %v1227_v25 = vadd.f32 %v1226_v22, %v1164_v56  ;;  %v1095_v26 = vadd.f32 %v1094_v16, %v1862_v3  ;;  %v1169_v3 = vmul.f32 %v1906_v54, %v1906_v54 }
 0x14f   :  { %v1096_v28 = vadd.f32 %v1095_v26, %v1904_v53  ;;  %v1228_v27 = vadd.f32 %v1227_v25, %v1165_v20  ;;  %v1170_v53 = vmul.f32 %v1947_v39, %v1947_v39 }
 0x151   :  { %v1229_v29 = vadd.f32 %v1228_v27, %v1166_v2  ;;  %v1097_v11 = vadd.f32 %v1096_v28, %v1910_v62 }
 0x153   :  { %v1098_v32 = vadd.f32 %v1097_v11, %v1885_v31  ;;  %v1230_v33 = vadd.f32 %v1229_v29, %v1167_v30  ;;  %v1172_v31 = vmul.f32 %v1929_v17, %v1929_v17 }
 0x155   :  { %v1231_v5 = vadd.f32 %v1230_v33, %v1168_v45  ;;  %v1099_v34 = vadd.f32 %v1098_v32, %v1906_v54  ;;  %v1173_v54 = vmul.f32 %v1949_v40, %v1949_v40 }
 0x157   :  { %v1100_v35 = vadd.f32 %v1099_v34, %v1947_v39  ;;  %v1232_v18 = vadd.f32 %v1231_v5, %v1169_v3  ;;  %v1174_v39 = vmul.f32 %v1972_v4, %v1972_v4 }
 0x159   :  { %v1233_v37 = vadd.f32 %v1232_v18, %v1170_v53  ;;  %v1101_v62 = vadd.f32 %v1100_v35, %v1952_v48 }
 0x15b   :  { %v1102_v49 = vadd.f32 %v1101_v62, %v1929_v17  ;;  %v1234_v43 = vadd.f32 %v1233_v37, %v1171_v38  ;;  %v1176_v17 = vmul.f32 %v1965_v57, %v1965_v57 }
 0x15d   :  { %v1235_v44 = vadd.f32 %v1234_v43, %v1172_v31  ;;  %v1103_v46 = vadd.f32 %v1102_v49, %v1949_v40  ;;  %v1177_v40 = vmul.f32 %v1978_v6, %v1978_v6 }
 0x15f   :  { %v1104_v1 = vadd.f32 %v1103_v46, %v1972_v4  ;;  %v1236_v47 = vadd.f32 %v1235_v44, %v1173_v54 }
 0x161   :  { %v1237_v42 = vadd.f32 %v1236_v47, %v1174_v39  ;;  %v1105_v48 = vadd.f32 %v1104_v1, %v1990_v10 }
 0x163   :  { %v1106_v52 = vadd.f32 %v1105_v48, %v1965_v57  ;;  %v1238_v0 = vadd.f32 %v1237_v42, %v1175_v51 }
 0x165   :  { %v1107_v55 = vadd.f32 %v1106_v52, %v1978_v6  ;;  %v1239_v58 = vadd.f32 %v1238_v0, %v1176_v17 }
 0x167   :  { %v1108_v4 = vrot.slane %v1107_v55, 4  ;;  %v1240_v24 = vadd.f32 %v1239_v58, %v1177_v40 }
 0x169   :  { %v1109_v59 = vadd.f32 %v1108_v4, %v1107_v55  ;;  %v1241_v60 = vrot.slane %v1240_v24, 4 }
 0x16b   :  { %v1110_v61 = vrot.slane %v1109_v59, 2  ;;  %v1242_v50 = vadd.f32 %v1241_v60, %v1240_v24 }
 0x16d   :  { %v1111_v63 = vadd.f32 %v1110_v61, %v1109_v59  ;;  %v1243_v10 = vrot.slane %v1242_v50, 2 }
 0x16f   :  { %v1112_v23 = vrot.slane %v1111_v63, 1  ;;  %v1244_v7 = vadd.f32 %v1243_v10, %v1242_v50 }
 0x171   :  { %v1245_v8 = vrot.slane %v1244_v7, 1  ;;  %v1113_v57 = vadd.f32 %v1112_v23, %v1111_v63 }
 0x173   :  { %v1246_v41 = vadd.f32 %v1245_v8, %v1244_v7 }
 0x175   :  { %v1248_v9 = vsel %vm1247_vm2, %v1113_v57, %v1246_v41 }
 0x176   :  { %1249 = vst [vmem:[%s2096_s4] sm:$0x3] %v1248_v9 }

// kernel: conv_block_forward.5
= control target key start
LH: loop header
LB: loop body
LE: loop exit
PB: predicated region body
PF: predicated region fallthrough
CT: control target
= control target key end

     0   :  { %s695_s0 = inlined_call_operand.vmem [shape: f32[512,128], index: 0, kind: input, shape index: {}]   ;;  %s696_s1 = inlined_call_operand.vmem [shape: f32[1,128], index: 1, kind: input, shape index: {}]   ;;  %s697_s2 = inlined_call_operand.vmem [shape: f32[1,128], index: 2, kind: input, shape index: {}]   ;;  %s698_s3 = inlined_call_operand.hbm [shape: f32[512,128], index: 3, kind: output, shape index: {}]  }
   0x1   :  { %v15_v0 = vld [vmem:[%s695_s0] sm:$0xff]  ;;  %v16_v4 = vld [vmem:[%s695_s0 + $0x8] sm:$0xff]  ;;  %v17_v5 = vld [vmem:[%s695_s0 + $0x10] sm:$0xff] }
   0x2   :  { %v359_v1 = vld [vmem:[%s696_s1] ss:$0 sm:$0xff]  ;;  %v18_v6 = vld [vmem:[%s695_s0 + $0x18] sm:$0xff]  ;;  %v20_v11 = vld [vmem:[%s695_s0 + $0x28] sm:$0xff] }
   0x3   :  { %v364_v2 = vld [vmem:[%s697_s2] ss:$0 sm:$0xff]  ;;  %v86_v3 = vmul.f32 %v359_v1, %v15_v0  ;;  %v87_v7 = vmul.f32 %v359_v1, %v16_v4  ;;  %v88_v8 = vmul.f32 %v359_v1, %v17_v5  ;;  %v89_v9 = vmul.f32 %v359_v1, %v18_v6  ;;  %v21_v12 = vld [vmem:[%s695_s0 + $0x30] sm:$0xff]  ;;  %v22_v17 = vld [vmem:[%s695_s0 + $0x38] sm:$0xff] }
   0x4   :  { %v19_v10 = vld [vmem:[%s695_s0 + $0x20] sm:$0xff]  ;;  %v91_v15 = vmul.f32 %v359_v1, %v20_v11  ;;  %v92_v16 = vmul.f32 %v359_v1, %v21_v12  ;;  %v24_v19 = vld [vmem:[%s695_s0 + $0x48] sm:$0xff]  ;;  %v93_v23 = vmul.f32 %v359_v1, %v22_v17  ;;  %v25_v24 = vld [vmem:[%s695_s0 + $0x50] sm:$0xff] }
   0x5   :  { %v157_v13 = vadd.f32 %v364_v2, %v86_v3  ;;  %v90_v14 = vmul.f32 %v359_v1, %v19_v10  ;;  %v23_v18 = vld [vmem:[%s695_s0 + $0x40] sm:$0xff]  ;;  %v158_v20 = vadd.f32 %v364_v2, %v87_v7  ;;  %v159_v21 = vadd.f32 %v364_v2, %v88_v8  ;;  %v26_v25 = vld [vmem:[%s695_s0 + $0x58] sm:$0xff]  ;;  %v28_v31 = vld [vmem:[%s695_s0 + $0x68] sm:$0xff] }
   0x6   :  { %v160_v22 = vadd.f32 %v364_v2, %v89_v9  ;;  %v27_v26 = vld [vmem:[%s695_s0 + $0x60] sm:$0xff]  ;;  %v162_v28 = vadd.f32 %v364_v2, %v91_v15  ;;  %v163_v29 = vadd.f32 %v364_v2, %v92_v16  ;;  %v94_v30 = vmul.f32 %v359_v1, %v23_v18  ;;  %v29_v32 = vld [vmem:[%s695_s0 + $0x70] sm:$0xff]  ;;  %v30_v33 = vld [vmem:[%s695_s0 + $0x78] sm:$0xff] }
   0x7   :  { %221 = vst [vmem:[#allocation2] sm:$0xff] %v157_v13  ;;  %v161_v27 = vadd.f32 %v364_v2, %v90_v14  ;;  %222 = vst [vmem:[#allocation2 + $0x8] sm:$0xff] %v158_v20  ;;  %v164_v34 = vadd.f32 %v364_v2, %v93_v23  ;;  %v95_v35 = vmul.f32 %v359_v1, %v24_v19  ;;  %v31_v38 = vld [vmem:[%s695_s0 + $0x80] sm:$0xff]  ;;  %v32_v43 = vld [vmem:[%s695_s0 + $0x88] sm:$0xff] }
   0x8   :  { %223 = vst [vmem:[#allocation2 + $0x10] sm:$0xff] %v159_v21  ;;  %224 = vst [vmem:[#allocation2 + $0x18] sm:$0xff] %v160_v22  ;;  %v96_v36 = vmul.f32 %v359_v1, %v25_v24  ;;  %v97_v37 = vmul.f32 %v359_v1, %v26_v25  ;;  %v165_v39 = vadd.f32 %v364_v2, %v94_v30  ;;  %v33_v44 = vld [vmem:[%s695_s0 + $0x90] sm:$0xff]  ;;  %v34_v45 = vld [vmem:[%s695_s0 + $0x98] sm:$0xff] }
   0x9   :  { %225 = vst [vmem:[#allocation2 + $0x20] sm:$0xff] %v161_v27  ;;  %226 = vst [vmem:[#allocation2 + $0x28] sm:$0xff] %v162_v28  ;;  %v98_v40 = vmul.f32 %v359_v1, %v27_v26  ;;  %v99_v41 = vmul.f32 %v359_v1, %v28_v31  ;;  %v100_v42 = vmul.f32 %v359_v1, %v29_v32  ;;  %v35_v50 = vld [vmem:[%s695_s0 + $0xa0] sm:$0xff]  ;;  %v36_v51 = vld [vmem:[%s695_s0 + $0xa8] sm:$0xff] }
   0xa   :  { %227 = vst [vmem:[#allocation2 + $0x30] sm:$0xff] %v163_v29  ;;  %228 = vst [vmem:[#allocation2 + $0x38] sm:$0xff] %v164_v34  ;;  %v166_v46 = vadd.f32 %v364_v2, %v95_v35  ;;  %v167_v47 = vadd.f32 %v364_v2, %v96_v36  ;;  %v168_v48 = vadd.f32 %v364_v2, %v97_v37  ;;  %v37_v52 = vld [vmem:[%s695_s0 + $0xb0] sm:$0xff]  ;;  %v38_v57 = vld [vmem:[%s695_s0 + $0xb8] sm:$0xff] }
   0xb   :  { %v101_v49 = vmul.f32 %v359_v1, %v30_v33  ;;  %229 = vst [vmem:[#allocation2 + $0x40] sm:$0xff] %v165_v39  ;;  %v169_v53 = vadd.f32 %v364_v2, %v98_v40  ;;  %v170_v54 = vadd.f32 %v364_v2, %v99_v41  ;;  %v171_v55 = vadd.f32 %v364_v2, %v100_v42  ;;  %v39_v62 = vld [vmem:[%s695_s0 + $0xc0] sm:$0xff]  ;;  %v40_v5 = vld [vmem:[%s695_s0 + $0xc8] sm:$0xff]  ;;  %v41_v6 = vld [vmem:[%s695_s0 + $0xd0] sm:$0xff] }
   0xc   :  { %v102_v56 = vmul.f32 %v359_v1, %v31_v38  ;;  %230 = vst [vmem:[#allocation2 + $0x48] sm:$0xff] %v166_v46  ;;  %231 = vst [vmem:[#allocation2 + $0x50] sm:$0xff] %v167_v47  ;;  %v103_v59 = vmul.f32 %v359_v1, %v32_v43  ;;  %v104_v60 = vmul.f32 %v359_v1, %v33_v44  ;;  %v42_v7 = vld [vmem:[%s695_s0 + $0xd8] sm:$0xff]  ;;  %v43_v12 = vld [vmem:[%s695_s0 + $0xe0] sm:$0xff] }
   0xd   :  { %232 = vst [vmem:[#allocation2 + $0x58] sm:$0xff] %v168_v48  ;;  %v172_v58 = vadd.f32 %v364_v2, %v101_v49  ;;  %v105_v61 = vmul.f32 %v359_v1, %v34_v45  ;;  %233 = vst [vmem:[#allocation2 + $0x60] sm:$0xff] %v169_v53  ;;  %v106_v0 = vmul.f32 %v359_v1, %v35_v50  ;;  %v44_v13 = vld [vmem:[%s695_s0 + $0xe8] sm:$0xff]  ;;  %v45_v14 = vld [vmem:[%s695_s0 + $0xf0] sm:$0xff] }
   0xe   :  { %234 = vst [vmem:[#allocation2 + $0x68] sm:$0xff] %v170_v54  ;;  %235 = vst [vmem:[#allocation2 + $0x70] sm:$0xff] %v171_v55  ;;  %v173_v63 = vadd.f32 %v364_v2, %v102_v56  ;;  %v107_v3 = vmul.f32 %v359_v1, %v36_v51  ;;  %v108_v4 = vmul.f32 %v359_v1, %v37_v52  ;;  %v46_v19 = vld [vmem:[%s695_s0 + $0xf8] sm:$0xff]  ;;  %v47_v24 = vld [vmem:[%s695_s0 + $0x100] sm:$0xff] }
   0xf   :  { %236 = vst [vmem:[#allocation2 + $0x78] sm:$0xff] %v172_v58  ;;  %v174_v8 = vadd.f32 %v364_v2, %v103_v59  ;;  %v175_v9 = vadd.f32 %v364_v2, %v104_v60  ;;  %v176_v10 = vadd.f32 %v364_v2, %v105_v61  ;;  %v109_v11 = vmul.f32 %v359_v1, %v38_v57  ;;  %v48_v29 = vld [vmem:[%s695_s0 + $0x108] sm:$0xff]  ;;  %v49_v30 = vld [vmem:[%s695_s0 + $0x110] sm:$0xff]  ;;  %v50_v31 = vld [vmem:[%s695_s0 + $0x118] sm:$0xff] }
  0x10   :  { %237 = vst [vmem:[#allocation2 + $0x80] sm:$0xff] %v173_v63  ;;  %v177_v15 = vadd.f32 %v364_v2, %v106_v0  ;;  %v178_v16 = vadd.f32 %v364_v2, %v107_v3  ;;  %v179_v17 = vadd.f32 %v364_v2, %v108_v4  ;;  %v110_v18 = vmul.f32 %v359_v1, %v39_v62  ;;  %v51_v36 = vld [vmem:[%s695_s0 + $0x120] sm:$0xff]  ;;  %v52_v37 = vld [vmem:[%s695_s0 + $0x128] sm:$0xff]  ;;  %v53_v38 = vld [vmem:[%s695_s0 + $0x130] sm:$0xff] }
  0x11   :  { %238 = vst [vmem:[#allocation2 + $0x88] sm:$0xff] %v174_v8  ;;  %239 = vst [vmem:[#allocation2 + $0x90] sm:$0xff] %v175_v9  ;;  %v180_v20 = vadd.f32 %v364_v2, %v109_v11  ;;  %v111_v21 = vmul.f32 %v359_v1, %v40_v5  ;;  %v112_v22 = vmul.f32 %v359_v1, %v41_v6  ;;  %v54_v43 = vld [vmem:[%s695_s0 + $0x138] sm:$0xff]  ;;  %v55_v48 = vld [vmem:[%s695_s0 + $0x140] sm:$0xff] }
  0x12   :  { %240 = vst [vmem:[#allocation2 + $0x98] sm:$0xff] %v176_v10  ;;  %v113_v23 = vmul.f32 %v359_v1, %v42_v7  ;;  %241 = vst [vmem:[#allocation2 + $0xa0] sm:$0xff] %v177_v15  ;;  %v181_v25 = vadd.f32 %v364_v2, %v110_v18  ;;  %v114_v26 = vmul.f32 %v359_v1, %v43_v12  ;;  %v56_v53 = vld [vmem:[%s695_s0 + $0x148] sm:$0xff]  ;;  %v57_v54 = vld [vmem:[%s695_s0 + $0x150] sm:$0xff] }
  0x13   :  { %242 = vst [vmem:[#allocation2 + $0xa8] sm:$0xff] %v178_v16  ;;  %243 = vst [vmem:[#allocation2 + $0xb0] sm:$0xff] %v179_v17  ;;  %v115_v27 = vmul.f32 %v359_v1, %v44_v13  ;;  %v116_v28 = vmul.f32 %v359_v1, %v45_v14  ;;  %v182_v32 = vadd.f32 %v364_v2, %v111_v21  ;;  %v58_v55 = vld [vmem:[%s695_s0 + $0x158] sm:$0xff]  ;;  %v59_v60 = vld [vmem:[%s695_s0 + $0x160] sm:$0xff] }
  0x14   :  { %244 = vst [vmem:[#allocation2 + $0xb8] sm:$0xff] %v180_v20  ;;  %v183_v33 = vadd.f32 %v364_v2, %v112_v22  ;;  %v184_v34 = vadd.f32 %v364_v2, %v113_v23  ;;  %v117_v35 = vmul.f32 %v359_v1, %v46_v19  ;;  %245 = vst [vmem:[#allocation2 + $0xc0] sm:$0xff] %v181_v25  ;;  %v60_v61 = vld [vmem:[%s695_s0 + $0x168] sm:$0xff]  ;;  %v61_v62 = vld [vmem:[%s695_s0 + $0x170] sm:$0xff] }
  0x15   :  { %v185_v39 = vadd.f32 %v364_v2, %v114_v26  ;;  %v186_v40 = vadd.f32 %v364_v2, %v115_v27  ;;  %v187_v41 = vadd.f32 %v364_v2, %v116_v28  ;;  %v118_v42 = vmul.f32 %v359_v1, %v47_v24  ;;  %246 = vst [vmem:[#allocation2 + $0xc8] sm:$0xff] %v182_v32  ;;  %v62_v5 = vld [vmem:[%s695_s0 + $0x178] sm:$0xff]  ;;  %v63_v10 = vld [vmem:[%s695_s0 + $0x180] sm:$0xff] }
  0x16   :  { %247 = vst [vmem:[#allocation2 + $0xd0] sm:$0xff] %v183_v33  ;;  %248 = vst [vmem:[#allocation2 + $0xd8] sm:$0xff] %v184_v34  ;;  %v188_v44 = vadd.f32 %v364_v2, %v117_v35  ;;  %v119_v45 = vmul.f32 %v359_v1, %v48_v29  ;;  %v120_v46 = vmul.f32 %v359_v1, %v49_v30 }
  0x17   :  { %v121_v47 = vmul.f32 %v359_v1, %v50_v31  ;;  %249 = vst [vmem:[#allocation2 + $0xe0] sm:$0xff] %v185_v39  ;;  %250 = vst [vmem:[#allocation2 + $0xe8] sm:$0xff] %v186_v40  ;;  %v189_v49 = vadd.f32 %v364_v2, %v118_v42  ;;  %v122_v50 = vmul.f32 %v359_v1, %v51_v36 }
  0x18   :  { %251 = vst [vmem:[#allocation2 + $0xf0] sm:$0xff] %v187_v41  ;;  %v123_v51 = vmul.f32 %v359_v1, %v52_v37  ;;  %v124_v52 = vmul.f32 %v359_v1, %v53_v38  ;;  %252 = vst [vmem:[#allocation2 + $0xf8] sm:$0xff] %v188_v44  ;;  %v190_v56 = vadd.f32 %v364_v2, %v119_v45 }
  0x19   :  { %v191_v57 = vadd.f32 %v364_v2, %v120_v46  ;;  %v192_v58 = vadd.f32 %v364_v2, %v121_v47  ;;  %v125_v59 = vmul.f32 %v359_v1, %v54_v43  ;;  %253 = vst [vmem:[#allocation2 + $0x100] sm:$0xff] %v189_v49  ;;  %v193_v63 = vadd.f32 %v364_v2, %v122_v50 }
  0x1a   :  { %v194_v0 = vadd.f32 %v364_v2, %v123_v51  ;;  %v195_v3 = vadd.f32 %v364_v2, %v124_v52  ;;  %v126_v4 = vmul.f32 %v359_v1, %v55_v48  ;;  %254 = vst [vmem:[#allocation2 + $0x108] sm:$0xff] %v190_v56  ;;  %v127_v7 = vmul.f32 %v359_v1, %v56_v53 }
  0x1b   :  { %255 = vst [vmem:[#allocation2 + $0x110] sm:$0xff] %v191_v57  ;;  %256 = vst [vmem:[#allocation2 + $0x118] sm:$0xff] %v192_v58  ;;  %v196_v6 = vadd.f32 %v364_v2, %v125_v59  ;;  %v128_v8 = vmul.f32 %v359_v1, %v57_v54  ;;  %v129_v9 = vmul.f32 %v359_v1, %v58_v55 }
  0x1c   :  { %8 = vsyncpa [#allocation3], 0  ;;  %257 = vst [vmem:[#allocation2 + $0x120] sm:$0xff] %v193_v63  ;;  %v197_v11 = vadd.f32 %v364_v2, %v126_v4  ;;  %v130_v12 = vmul.f32 %v359_v1, %v59_v60  ;;  %v131_v13 = vmul.f32 %v359_v1, %v60_v61  ;;  %v132_v14 = vmul.f32 %v359_v1, %v61_v62  ;;  %v64_v15 = vld [vmem:[%s695_s0 + $0x188] sm:$0xff]  ;;  %v65_v16 = vld [vmem:[%s695_s0 + $0x190] sm:$0xff] }
  0x1d   :  { %258 = vst [vmem:[#allocation2 + $0x128] sm:$0xff] %v194_v0  ;;  %259 = vst [vmem:[#allocation2 + $0x130] sm:$0xff] %v195_v3  ;;  %v66_v17 = vld [vmem:[%s695_s0 + $0x198] sm:$0xff]  ;;  %v198_v18 = vadd.f32 %v364_v2, %v127_v7  ;;  %v199_v19 = vadd.f32 %v364_v2, %v128_v8  ;;  %v200_v20 = vadd.f32 %v364_v2, %v129_v9  ;;  %v67_v22 = vld [vmem:[%s695_s0 + $0x1a0] sm:$0xff] }
  0x1e   :  { %260 = vst [vmem:[#allocation2 + $0x138] sm:$0xff] %v196_v6  ;;  %v133_v21 = vmul.f32 %v359_v1, %v62_v5  ;;  %v68_v23 = vld [vmem:[%s695_s0 + $0x1a8] sm:$0xff]  ;;  %v69_v24 = vld [vmem:[%s695_s0 + $0x1b0] sm:$0xff]  ;;  %261 = vst [vmem:[#allocation2 + $0x140] sm:$0xff] %v197_v11  ;;  %v201_v25 = vadd.f32 %v364_v2, %v130_v12  ;;  %v202_v26 = vadd.f32 %v364_v2, %v131_v13 }
  0x1f   :  { %v203_v27 = vadd.f32 %v364_v2, %v132_v14  ;;  %v134_v28 = vmul.f32 %v359_v1, %v63_v10  ;;  %v70_v29 = vld [vmem:[%s695_s0 + $0x1b8] sm:$0xff]  ;;  %262 = vst [vmem:[#allocation2 + $0x148] sm:$0xff] %v198_v18  ;;  %263 = vst [vmem:[#allocation2 + $0x150] sm:$0xff] %v199_v19  ;;  %v135_v31 = vmul.f32 %v359_v1, %v64_v15  ;;  %v71_v34 = vld [vmem:[%s695_s0 + $0x1c0] sm:$0xff] }
  0x20   :  { %264 = vst [vmem:[#allocation2 + $0x158] sm:$0xff] %v200_v20  ;;  %v204_v30 = vadd.f32 %v364_v2, %v133_v21  ;;  %v136_v32 = vmul.f32 %v359_v1, %v65_v16  ;;  %v137_v33 = vmul.f32 %v359_v1, %v66_v17  ;;  %265 = vst [vmem:[#allocation2 + $0x160] sm:$0xff] %v201_v25  ;;  %v72_v39 = vld [vmem:[%s695_s0 + $0x1c8] sm:$0xff]  ;;  %v73_v40 = vld [vmem:[%s695_s0 + $0x1d0] sm:$0xff] }
  0x21   :  { %266 = vst [vmem:[#allocation2 + $0x168] sm:$0xff] %v202_v26  ;;  %267 = vst [vmem:[#allocation2 + $0x170] sm:$0xff] %v203_v27  ;;  %v205_v35 = vadd.f32 %v364_v2, %v134_v28  ;;  %v138_v36 = vmul.f32 %v359_v1, %v67_v22  ;;  %v139_v37 = vmul.f32 %v359_v1, %v68_v23  ;;  %v74_v41 = vld [vmem:[%s695_s0 + $0x1d8] sm:$0xff]  ;;  %v75_v46 = vld [vmem:[%s695_s0 + $0x1e0] sm:$0xff] }
  0x22   :  { %v140_v38 = vmul.f32 %v359_v1, %v69_v24  ;;  %268 = vst [vmem:[#allocation2 + $0x178] sm:$0xff] %v204_v30  ;;  %v206_v42 = vadd.f32 %v364_v2, %v135_v31  ;;  %v207_v43 = vadd.f32 %v364_v2, %v136_v32  ;;  %v208_v44 = vadd.f32 %v364_v2, %v137_v33  ;;  %v76_v47 = vld [vmem:[%s695_s0 + $0x1e8] sm:$0xff]  ;;  %v77_v48 = vld [vmem:[%s695_s0 + $0x1f0] sm:$0xff]  ;;  %v78_v53 = vld [vmem:[%s695_s0 + $0x1f8] sm:$0xff]  ;;  %s330_s0 = smov [#allocation2]  }
  0x23   :  { %v141_v45 = vmul.f32 %v359_v1, %v70_v29  ;;  %269 = vst [vmem:[#allocation2 + $0x180] sm:$0xff] %v205_v35  ;;  %v209_v49 = vadd.f32 %v364_v2, %v138_v36  ;;  %v210_v50 = vadd.f32 %v364_v2, %v139_v37  ;;  %v142_v52 = vmul.f32 %v359_v1, %v71_v34  ;;  %s290_s26 = sshll.u32 %s330_s0, 4  ;;  %s291_s26 = int_to_ptr.vmem [resolvable:$true] %s290_s26 }
  0x24   :  { %v211_v51 = vadd.f32 %v364_v2, %v140_v38  ;;  %270 = vst [vmem:[#allocation2 + $0x188] sm:$0xff] %v206_v42  ;;  %271 = vst [vmem:[#allocation2 + $0x190] sm:$0xff] %v207_v43  ;;  %v143_v55 = vmul.f32 %v359_v1, %v72_v39  ;;  %v144_v56 = vmul.f32 %v359_v1, %v73_v40  ;;  %s306_s27 = scalar_lea.vmem %s291_s26, 8192  ;;  %p311_p1 = scmp.lt.s32.totalorder %s291_s26, %s291_s26 }
  0x25   :  { %272 = vst [vmem:[#allocation2 + $0x198] sm:$0xff] %v208_v44  ;;  %v212_v54 = vadd.f32 %v364_v2, %v141_v45  ;;  %v145_v57 = vmul.f32 %v359_v1, %v74_v41  ;;  %273 = vst [vmem:[#allocation2 + $0x1a0] sm:$0xff] %v209_v49  ;;  %v213_v58 = vadd.f32 %v364_v2, %v142_v52  ;;  %p307_p0 = scmp.ne.s32.totalorder %s291_s26, %s306_s27  ;;  %p312_p2 = scmp.lt.s32.totalorder %s306_s27, %s306_s27 }
  0x26   :  { %274 = vst [vmem:[#allocation2 + $0x1a8] sm:$0xff] %v210_v50  ;;  %275 = vst [vmem:[#allocation2 + $0x1b0] sm:$0xff] %v211_v51  ;;  %v146_v59 = vmul.f32 %v359_v1, %v75_v46  ;;  %v147_v60 = vmul.f32 %v359_v1, %v76_v47  ;;  %v148_v61 = vmul.f32 %v359_v1, %v77_v48 }
  0x27   :  { %276 = vst [vmem:[#allocation2 + $0x1b8] sm:$0xff] %v212_v54  ;;  %v214_v62 = vadd.f32 %v364_v2, %v143_v55  ;;  %v215_v63 = vadd.f32 %v364_v2, %v144_v56  ;;  %v216_v0 = vadd.f32 %v364_v2, %v145_v57  ;;  %v149_v3 = vmul.f32 %v359_v1, %v78_v53  ;;  %p313_p3 = por %p312_p2, %p311_p1 }
  0x28   :  { %277 = vst [vmem:[#allocation2 + $0x1c0] sm:$0xff] %v213_v58  ;;  %v217_v4 = vadd.f32 %v364_v2, %v146_v59  ;;  %v218_v5 = vadd.f32 %v364_v2, %v147_v60  ;;  %v219_v6 = vadd.f32 %v364_v2, %v148_v61 }
  0x29   :  { %278 = vst [vmem:[#allocation2 + $0x1c8] sm:$0xff] %v214_v62  ;;  %279 = vst [vmem:[#allocation2 + $0x1d0] sm:$0xff] %v215_v63  ;;  %v220_v7 = vadd.f32 %v364_v2, %v149_v3  ;;  %p314_p4 = pnand %p313_p3, %p307_p0 }
  0x2a   :  { %280 = vst [vmem:[#allocation2 + $0x1d8] sm:$0xff] %v216_v0  ;;  %281 = vst [vmem:[#allocation2 + $0x1e0] sm:$0xff] %v217_v4 }
  0x2b   :  { %282 = vst [vmem:[#allocation2 + $0x1e8] sm:$0xff] %v218_v5  ;;  %283 = vst [vmem:[#allocation2 + $0x1f0] sm:$0xff] %v219_v6 }
  0x2c   :  { %284 = vst [vmem:[#allocation2 + $0x1f8] sm:$0xff] %v220_v7 }
  0x2d   :  { %317 = shalt.err (!%p314_p4)
}
  0x2e   :  { %s318_s30 = scalar_lea.hbm %s698_s3, 8192 }
  0x2f   :  { %p319_p5 = scmp.ne.s32.totalorder %s698_s3, %s318_s30  ;;  %p322_p6 = scmp.lt.u32.totalorder %s318_s30, %s698_s3 }
  0x31   :  { %p324_p7 = pnand %p322_p6, %p319_p5 }
  0x33   :  { %327 = shalt.err (!%p324_p7)
}
  0x34   :  { %s331_s8 = smov 128   ;;  %s332_s9 = smov 8  }
  0x35   :  { %296 = dma.vmem_to_hbm [thread:$0]  %s291_s26, 8192, %s698_s3, [#allocation3], %s331_s8, %s331_s8, %s332_s9  }
  0x36   :  { %328 = dma.done.wait [#allocation3], 8192  }
  0x37   :  { %329 = vsyncadd [#allocation3], 4294959104 }
  0x38   :  { %300 = vsyncpa [#allocation3], 1 }

// kernel: conv_block_forward.4
= control target key start
LH: loop header
LB: loop body
LE: loop exit
PB: predicated region body
PF: predicated region fallthrough
CT: control target
= control target key end

     0   :  { %v2479_v0 = vmov 0   ;;  %vm776_vm0 = vcmask 261120   ;;  %vm2040_vm1 = vcmask 1040384   ;;  %s3385_s1 = inlined_call_operand.vmem [shape: bf16[288,128], index: 1, kind: input, shape index: {}]   ;;  %s3386_s0 = inlined_call_operand.vmem [shape: bf16[512,288], index: 0, kind: input, shape index: {}]   ;;  %s3387_s2 = inlined_call_operand.vmem [shape: f32[1,128], index: 2, kind: input, shape index: {}]   ;;  %s3388_s3 = inlined_call_operand.vmem [shape: f32[512,128], index: 3, kind: output, shape index: {0}]   ;;  %s3389_s4 = inlined_call_operand.vmem [shape: f32[1,2,128], index: 4, kind: output, shape index: {1}]  }
   0x1   :  { %873 = vmatprep.subr.bf16.mxu0 %v2479_v0  ;;  %2300 = vmatprep.subr.bf16.mxu1 %v2479_v0  ;;  %v2333_v1 = vld [vmem:[%s3385_s1] sm:$0xff]   ;;  %v2334_v2 = vld [vmem:[%s3385_s1 + $0x8] sm:$0xff]   ;;  %v2335_v3 = vld [vmem:[%s3385_s1 + $0x10] sm:$0xff]  }
   0x2   :  { %874 = vmatpush1.bf16.msra.mxu0 %v2333_v1  ;;  %2316 = vmatpush1.bf16.msra.mxu1 %v2333_v1  ;;  %v2336_v4 = vld [vmem:[%s3385_s1 + $0x18] sm:$0xff]   ;;  %v2337_v5 = vld [vmem:[%s3385_s1 + $0x20] sm:$0xff]   ;;  %v2338_v7 = vld [vmem:[%s3385_s1 + $0x28] sm:$0xff]  }
   0x3   :  { %875 = vmatprep.subr.bf16.mxu0 %v2479_v0  ;;  %2301 = vmatprep.subr.bf16.mxu1 %v2479_v0  ;;  %v2351_v6 = vld [vmem:[%s3386_s0 + $0x4] ss:$12 sps:$4 sm:$0xff]   ;;  %v2340_v10 = vld [vmem:[%s3385_s1 + $0x38] sm:$0xff]   ;;  %v2342_v12 = vld [vmem:[%s3385_s1 + $0x48] sm:$0xff]  }
   0x4   :  { %v2354_v8 = vld [vmem:[%s3386_s0 + $0x244] ss:$12 sps:$4 sm:$0xff]   ;;  %905 = vmatprep.mubr.bf16.mxu0 %v2351_v6  ;;  %v2344_v14 = vld [vmem:[%s3385_s1 + $0x58] sm:$0xff]   ;;  %v2346_v16 = vld [vmem:[%s3385_s1 + $0x68] sm:$0xff]  }
   0x5   :  { %1097 = vmatprep.mubr.bf16.mxu1 %v2354_v8  ;;  %v2339_v9 = vld [vmem:[%s3385_s1 + $0x30] sm:$0xff]   ;;  %v2341_v11 = vld [vmem:[%s3385_s1 + $0x40] sm:$0xff]   ;;  %v2348_v18 = vld [vmem:[%s3385_s1 + $0x78] sm:$0xff]  }
   0x6   :  { %876 = vmatpush1.bf16.msra.mxu0 %v2334_v2  ;;  %2317 = vmatpush1.bf16.msra.mxu1 %v2334_v2  ;;  %v2343_v13 = vld [vmem:[%s3385_s1 + $0x50] sm:$0xff]   ;;  %v2345_v15 = vld [vmem:[%s3385_s1 + $0x60] sm:$0xff]   ;;  %v2355_v22 = vld [vmem:[%s3386_s0 + $0x1c] ss:$12 sps:$4 sm:$0xff]  }
   0x7   :  { %877 = vmatprep.subr.bf16.mxu0 %v2479_v0  ;;  %2302 = vmatprep.subr.bf16.mxu1 %v2479_v0  ;;  %v2347_v17 = vld [vmem:[%s3385_s1 + $0x70] sm:$0xff]   ;;  %v2373_v19 = vld [vmem:[%s3385_s1 + $0x80] sm:$0xff]   ;;  %v2357_v23 = vld [vmem:[%s3386_s0 + $0x25c] ss:$12 sps:$4 sm:$0xff]  }
   0x8   :  { %v2349_v20 = vld [vmem:[%s3386_s0] ss:$12 sps:$4 sm:$0xff]   ;;  %v2359_v25 = vld [vmem:[%s3386_s0 + $0x18] ss:$12 sps:$4 sm:$0xff]   ;;  %v2365_v29 = vld [vmem:[%s3386_s0 + $0x30] ss:$12 sps:$4 sm:$0xff]  }
   0x9   :  { %v2352_v21 = vld [vmem:[%s3386_s0 + $0x240] ss:$12 sps:$4 sm:$0xff]   ;;  %v2360_v26 = vld [vmem:[%s3386_s0 + $0x258] ss:$12 sps:$4 sm:$0xff]   ;;  %v2366_v30 = vld [vmem:[%s3386_s0 + $0x270] ss:$12 sps:$4 sm:$0xff]  }
   0xa   :  { %878 = vmatpush1.bf16.msra.mxu0 %v2335_v3  ;;  %2318 = vmatpush1.bf16.msra.mxu1 %v2335_v3  ;;  %v2398_v24 = vld [vmem:[%s3385_s1 + $0x88] sm:$0xff]   ;;  %v2361_v27 = vld [vmem:[%s3386_s0 + $0x34] ss:$12 sps:$4 sm:$0xff]   ;;  %v2374_v35 = vld [vmem:[%s3386_s0 + $0x64] ss:$12 sps:$4 sm:$0xff]  }
   0xb   :  { %879 = vmatprep.subr.bf16.mxu0 %v2479_v0  ;;  %2303 = vmatprep.subr.bf16.mxu1 %v2479_v0  ;;  %v2363_v28 = vld [vmem:[%s3386_s0 + $0x274] ss:$12 sps:$4 sm:$0xff]   ;;  %v2367_v31 = vld [vmem:[%s3386_s0 + $0x4c] ss:$12 sps:$4 sm:$0xff]   ;;  %v2376_v36 = vld [vmem:[%s3386_s0 + $0x2a4] ss:$12 sps:$4 sm:$0xff]  }
   0xc   :  { %v2369_v32 = vld [vmem:[%s3386_s0 + $0x28c] ss:$12 sps:$4 sm:$0xff]   ;;  %v2371_v33 = vld [vmem:[%s3386_s0 + $0x48] ss:$12 sps:$4 sm:$0xff]   ;;  %v2390_v45 = vld [vmem:[%s3386_s0 + $0x90] ss:$12 sps:$4 sm:$0xff]  }
   0xd   :  { %v2372_v34 = vld [vmem:[%s3386_s0 + $0x288] ss:$12 sps:$4 sm:$0xff]   ;;  %v2378_v37 = vld [vmem:[%s3386_s0 + $0x60] ss:$12 sps:$4 sm:$0xff]   ;;  %v2384_v41 = vld [vmem:[%s3386_s0 + $0x78] ss:$12 sps:$4 sm:$0xff]  }
   0xe   :  { %880 = vmatpush1.bf16.msra.mxu0 %v2336_v4  ;;  %2319 = vmatpush1.bf16.msra.mxu1 %v2336_v4  ;;  %v2379_v38 = vld [vmem:[%s3386_s0 + $0x2a0] ss:$12 sps:$4 sm:$0xff]   ;;  %v2380_v39 = vld [vmem:[%s3386_s0 + $0x7c] ss:$12 sps:$4 sm:$0xff]   ;;  %v2385_v42 = vld [vmem:[%s3386_s0 + $0x2b8] ss:$12 sps:$4 sm:$0xff]  }
   0xf   :  { %881 = vmatprep.subr.bf16.mxu0 %v2479_v0  ;;  %2304 = vmatprep.subr.bf16.mxu1 %v2479_v0  ;;  %v2382_v40 = vld [vmem:[%s3386_s0 + $0x2bc] ss:$12 sps:$4 sm:$0xff]   ;;  %v2386_v43 = vld [vmem:[%s3386_s0 + $0x94] ss:$12 sps:$4 sm:$0xff]   ;;  %v2392_v47 = vld [vmem:[%s3386_s0 + $0xac] ss:$12 sps:$4 sm:$0xff]  }
  0x10   :  { %v2388_v44 = vld [vmem:[%s3386_s0 + $0x2d4] ss:$12 sps:$4 sm:$0xff]   ;;  %v2391_v46 = vld [vmem:[%s3386_s0 + $0x2d0] ss:$12 sps:$4 sm:$0xff]   ;;  %v2394_v48 = vld [vmem:[%s3386_s0 + $0x2ec] ss:$12 sps:$4 sm:$0xff]  }
  0x11   :  { %v2396_v49 = vld [vmem:[%s3386_s0 + $0xa8] ss:$12 sps:$4 sm:$0xff]   ;;  %v2399_v51 = vld [vmem:[%s3386_s0 + $0xc4] ss:$12 sps:$4 sm:$0xff]   ;;  %v2402_v53 = vld [vmem:[%s3386_s0 + $0xc0] ss:$12 sps:$4 sm:$0xff]  }
  0x12   :  { %882 = vmatpush1.bf16.msra.mxu0 %v2337_v5  ;;  %2320 = vmatpush1.bf16.msra.mxu1 %v2337_v5  ;;  %v2397_v50 = vld [vmem:[%s3386_s0 + $0x2e8] ss:$12 sps:$4 sm:$0xff]   ;;  %v2403_v54 = vld [vmem:[%s3386_s0 + $0x20] ss:$12 sps:$4 sm:$0xff]   ;;  %v2406_v56 = vld [vmem:[%s3386_s0 + $0x38] ss:$12 sps:$4 sm:$0xff]  }
  0x13   :  { %883 = vmatprep.subr.bf16.mxu0 %v2479_v0  ;;  %2305 = vmatprep.subr.bf16.mxu1 %v2479_v0  ;;  %v2401_v52 = vld [vmem:[%s3386_s0 + $0x8] ss:$12 sps:$4 sm:$0xff]   ;;  %v2407_v57 = vld [vmem:[%s3386_s0 + $0xd8] ss:$12 sps:$4 sm:$0xff]   ;;  %v2408_v58 = vld [vmem:[%s3386_s0 + $0x50] ss:$12 sps:$4 sm:$0xff]  }
  0x14   :  { %v2404_v55 = vld [vmem:[%s3386_s0 + $0xdc] ss:$12 sps:$4 sm:$0xff]   ;;  %v2409_v59 = vld [vmem:[%s3386_s0 + $0xf4] ss:$12 sps:$4 sm:$0xff]   ;;  %v2414_v63 = vld [vmem:[%s3386_s0 + $0x10c] ss:$12 sps:$4 sm:$0xff]  }
  0x15   :  { %v2411_v60 = vld [vmem:[%s3386_s0 + $0x68] ss:$12 sps:$4 sm:$0xff]   ;;  %v2412_v61 = vld [vmem:[%s3386_s0 + $0xf0] ss:$12 sps:$4 sm:$0xff]   ;;  %v2413_v62 = vld [vmem:[%s3386_s0 + $0x80] ss:$12 sps:$4 sm:$0xff]  }
  0x16   :  { %884 = vmatpush1.bf16.msra.mxu0 %v2338_v7  ;;  %2321 = vmatpush1.bf16.msra.mxu1 %v2338_v7  ;;  %v2417_v1 = vld [vmem:[%s3386_s0 + $0x108] ss:$12 sps:$4 sm:$0xff]   ;;  %v2418_v2 = vld [vmem:[%s3386_s0 + $0xb0] ss:$12 sps:$4 sm:$0xff]   ;;  %v2422_v5 = vld [vmem:[%s3386_s0 + $0x120] ss:$12 sps:$4 sm:$0xff]  }
  0x17   :  { %885 = vmatprep.subr.bf16.mxu0 %v2479_v0  ;;  %2306 = vmatprep.subr.bf16.mxu1 %v2479_v0  ;;  %v2419_v3 = vld [vmem:[%s3386_s0 + $0x124] ss:$12 sps:$4 sm:$0xff]   ;;  %v2421_v4 = vld [vmem:[%s3386_s0 + $0xc8] ss:$12 sps:$4 sm:$0xff]   ;;  %v2423_v6 = vld [vmem:[%s3386_s0 + $0xe0] ss:$12 sps:$4 sm:$0xff]  }
  0x18   :  { %v2424_v7 = vld [vmem:[%s3386_s0 + $0x13c] ss:$12 sps:$4 sm:$0xff]   ;;  %v2426_v8 = vld [vmem:[%s3386_s0 + $0xf8] ss:$12 sps:$4 sm:$0xff]  }
  0x1a   :  { %886 = vmatpush1.bf16.msra.mxu0 %v2339_v9  ;;  %2322 = vmatpush1.bf16.msra.mxu1 %v2339_v9  ;;  %v2427_v9 = vld [vmem:[%s3386_s0 + $0x138] ss:$12 sps:$4 sm:$0xff]  }
  0x1b   :  { %887 = vmatprep.subr.bf16.mxu0 %v2479_v0  ;;  %2307 = vmatprep.subr.bf16.mxu1 %v2479_v0 }
  0x1e   :  { %888 = vmatpush1.bf16.msra.mxu0 %v2340_v10  ;;  %2323 = vmatpush1.bf16.msra.mxu1 %v2340_v10  ;;  %v2428_v10 = vld [vmem:[%s3386_s0 + $0x110] ss:$12 sps:$4 sm:$0xff]  }
  0x1f   :  { %889 = vmatprep.subr.bf16.mxu0 %v2479_v0  ;;  %2308 = vmatprep.subr.bf16.mxu1 %v2479_v0 }
  0x22   :  { %890 = vmatpush1.bf16.msra.mxu0 %v2341_v11  ;;  %2324 = vmatpush1.bf16.msra.mxu1 %v2341_v11  ;;  %v2429_v11 = vld [vmem:[%s3386_s0 + $0x154] ss:$12 sps:$4 sm:$0xff]  }
  0x23   :  { %891 = vmatprep.subr.bf16.mxu0 %v2479_v0  ;;  %2309 = vmatprep.subr.bf16.mxu1 %v2479_v0 }
  0x26   :  { %892 = vmatpush1.bf16.msra.mxu0 %v2342_v12  ;;  %2325 = vmatpush1.bf16.msra.mxu1 %v2342_v12  ;;  %v2431_v12 = vld [vmem:[%s3386_s0 + $0x128] ss:$12 sps:$4 sm:$0xff]  }
  0x27   :  { %893 = vmatprep.subr.bf16.mxu0 %v2479_v0  ;;  %2310 = vmatprep.subr.bf16.mxu1 %v2479_v0 }
  0x2a   :  { %894 = vmatpush1.bf16.msra.mxu0 %v2343_v13  ;;  %2326 = vmatpush1.bf16.msra.mxu1 %v2343_v13  ;;  %v2432_v13 = vld [vmem:[%s3386_s0 + $0x150] ss:$12 sps:$4 sm:$0xff]  }
  0x2b   :  { %895 = vmatprep.subr.bf16.mxu0 %v2479_v0  ;;  %2311 = vmatprep.subr.bf16.mxu1 %v2479_v0 }
  0x2e   :  { %896 = vmatpush1.bf16.msra.mxu0 %v2344_v14  ;;  %2327 = vmatpush1.bf16.msra.mxu1 %v2344_v14  ;;  %v2433_v14 = vld [vmem:[%s3386_s0 + $0x140] ss:$12 sps:$4 sm:$0xff]  }
  0x2f   :  { %897 = vmatprep.subr.bf16.mxu0 %v2479_v0  ;;  %2312 = vmatprep.subr.bf16.mxu1 %v2479_v0 }
  0x32   :  { %898 = vmatpush1.bf16.msra.mxu0 %v2345_v15  ;;  %2328 = vmatpush1.bf16.msra.mxu1 %v2345_v15  ;;  %v2434_v15 = vld [vmem:[%s3386_s0 + $0x16c] ss:$12 sps:$4 sm:$0xff]  }
  0x33   :  { %899 = vmatprep.subr.bf16.mxu0 %v2479_v0  ;;  %2313 = vmatprep.subr.bf16.mxu1 %v2479_v0 }
  0x36   :  { %900 = vmatpush1.bf16.msra.mxu0 %v2346_v16  ;;  %2329 = vmatpush1.bf16.msra.mxu1 %v2346_v16  ;;  %v2436_v16 = vld [vmem:[%s3386_s0 + $0x158] ss:$12 sps:$4 sm:$0xff]  }
  0x37   :  { %901 = vmatprep.subr.bf16.mxu0 %v2479_v0  ;;  %2314 = vmatprep.subr.bf16.mxu1 %v2479_v0 }
  0x3a   :  { %902 = vmatpush1.bf16.msra.mxu0 %v2347_v17  ;;  %2330 = vmatpush1.bf16.msra.mxu1 %v2347_v17  ;;  %v2437_v17 = vld [vmem:[%s3386_s0 + $0x168] ss:$12 sps:$4 sm:$0xff]  }
  0x3b   :  { %903 = vmatprep.subr.bf16.mxu0 %v2479_v0  ;;  %2315 = vmatprep.subr.bf16.mxu1 %v2479_v0  ;;  %v2416_v0 = vld [vmem:[%s3386_s0 + $0x98] ss:$12 sps:$4 sm:$0xff]  }
  0x3e   :  { %904 = vmatpush1.bf16.msra.mxu0 %v2348_v18  ;;  %2331 = vmatpush1.bf16.msra.mxu1 %v2348_v18  ;;  %v2438_v18 = vld [vmem:[%s3386_s0 + $0x170] ss:$12 sps:$4 sm:$0xff]  }
  0x3f   :  { %2232 = vmatprep.subr.bf16.mxu1 %v2373_v19 }
  0x41   :  { %906 = vmatmul.mubr.bf16.vlgmr.msra.gmra.mrb[0].mxu0 %v2349_v20  ;;  %1098 = vmatmul.mubr.bf16.vlgmr.msra.gmra.mrb[0].mxu1 %v2352_v21  ;;  %v2441_v20 = vld [vmem:[%s3386_s0 + $0x188] ss:$12 sps:$4 sm:$0xff]   ;;  %v2442_v21 = vld [vmem:[%s3386_s0 + $0x180] ss:$12 sps:$4 sm:$0xff]  }
  0x42   :  { %913 = vmatprep.mubr.bf16.mxu0 %v2355_v22  ;;  %1105 = vmatprep.mubr.bf16.mxu1 %v2357_v23  ;;  %v2443_v22 = vld [vmem:[%s3386_s0 + $0x1a0] ss:$12 sps:$4 sm:$0xff]   ;;  %v2444_v23 = vld [vmem:[%s3386_s0 + $0x19c] ss:$12 sps:$4 sm:$0xff]  }
  0x43   :  { %2233 = vmatpush3.bf16.msra.mxu1 %v2373_v19  ;;  %v2439_v19 = vld [vmem:[%s3386_s0 + $0x184] ss:$12 sps:$4 sm:$0xff]  }
  0x44   :  { %2234 = vmatprep.subr.bf16.mxu1 %v2398_v24 }
  0x47   :  { %2235 = vmatpush3.bf16.msra.mxu1 %v2398_v24  ;;  %v2446_v24 = vld [vmem:[%s3386_s0 + $0x1b8] ss:$12 sps:$4 sm:$0xff]  }
  0x49   :  { %914 = vmatmul.mubr.bf16.gmra.mrb[4].mxu0 %v2359_v25  ;;  %1106 = vmatmul.mubr.bf16.gmra.mrb[4].mxu1 %v2360_v26  ;;  %v2447_v25 = vld [vmem:[%s3386_s0 + $0x198] ss:$12 sps:$4 sm:$0xff]   ;;  %v2448_v26 = vld [vmem:[%s3386_s0 + $0x1d0] ss:$12 sps:$4 sm:$0xff]  }
  0x4a   :  { %921 = vmatprep.mubr.bf16.mxu0 %v2361_v27  ;;  %1113 = vmatprep.mubr.bf16.mxu1 %v2363_v28  ;;  %v2449_v27 = vld [vmem:[%s3386_s0 + $0x1b4] ss:$12 sps:$4 sm:$0xff]  }
  0x4b   :  { %v2451_v28 = vld [vmem:[%s3386_s0 + $0x1e8] ss:$12 sps:$4 sm:$0xff]  }
  0x51   :  { %922 = vmatmul.mubr.bf16.gmra.mrb[8].mxu0 %v2365_v29  ;;  %1114 = vmatmul.mubr.bf16.gmra.mrb[8].mxu1 %v2366_v30  ;;  %v2452_v29 = vld [vmem:[%s3386_s0 + $0x1b0] ss:$12 sps:$4 sm:$0xff]   ;;  %v2453_v30 = vld [vmem:[%s3386_s0 + $0x200] ss:$12 sps:$4 sm:$0xff]  }
  0x52   :  { %929 = vmatprep.mubr.bf16.mxu0 %v2367_v31  ;;  %1121 = vmatprep.mubr.bf16.mxu1 %v2369_v32  ;;  %v2454_v31 = vld [vmem:[%s3386_s0 + $0x1cc] ss:$12 sps:$4 sm:$0xff]  }
  0x53   :  { %v2456_v32 = vld [vmem:[%s3386_s0 + $0x218] ss:$12 sps:$4 sm:$0xff]  }
  0x59   :  { %930 = vmatmul.mubr.bf16.gmra.mrb[12].mxu0 %v2371_v33  ;;  %1122 = vmatmul.mubr.bf16.gmra.mrb[12].mxu1 %v2372_v34  ;;  %v2457_v33 = vld [vmem:[%s3386_s0 + $0x1c8] ss:$12 sps:$4 sm:$0xff]   ;;  %v2458_v34 = vld [vmem:[%s3386_s0 + $0x230] ss:$12 sps:$4 sm:$0xff]  }
  0x5a   :  { %937 = vmatprep.mubr.bf16.mxu0 %v2374_v35  ;;  %1129 = vmatprep.mubr.bf16.mxu1 %v2376_v36  ;;  %v2459_v35 = vld [vmem:[%s3386_s0 + $0x1e4] ss:$12 sps:$4 sm:$0xff]   ;;  %v2461_v36 = vld [vmem:[%s3386_s0 + $0x248] ss:$12 sps:$4 sm:$0xff]  }
  0x61   :  { %938 = vmatmul.mubr.bf16.gmra.mrb[16].mxu0 %v2378_v37  ;;  %1130 = vmatmul.mubr.bf16.gmra.mrb[16].mxu1 %v2379_v38  ;;  %v2462_v37 = vld [vmem:[%s3386_s0 + $0x1e0] ss:$12 sps:$4 sm:$0xff]  }
  0x62   :  { %945 = vmatprep.mubr.bf16.mxu0 %v2380_v39  ;;  %1137 = vmatprep.mubr.bf16.mxu1 %v2382_v40  ;;  %v2463_v38 = vld [vmem:[%s3386_s0 + $0x260] ss:$12 sps:$4 sm:$0xff]   ;;  %v2464_v39 = vld [vmem:[%s3386_s0 + $0x1fc] ss:$12 sps:$4 sm:$0xff]   ;;  %v2466_v40 = vld [vmem:[%s3386_s0 + $0x278] ss:$12 sps:$4 sm:$0xff]  }
  0x69   :  { %946 = vmatmul.mubr.bf16.gmra.mrb[20].mxu0 %v2384_v41  ;;  %1138 = vmatmul.mubr.bf16.gmra.mrb[20].mxu1 %v2385_v42  ;;  %v2467_v41 = vld [vmem:[%s3386_s0 + $0x1f8] ss:$12 sps:$4 sm:$0xff]   ;;  %v2468_v42 = vld [vmem:[%s3386_s0 + $0x290] ss:$12 sps:$4 sm:$0xff]  }
  0x6a   :  { %953 = vmatprep.mubr.bf16.mxu0 %v2386_v43  ;;  %1145 = vmatprep.mubr.bf16.mxu1 %v2388_v44  ;;  %v2469_v43 = vld [vmem:[%s3386_s0 + $0x214] ss:$12 sps:$4 sm:$0xff]  }
  0x6b   :  { %v2471_v44 = vld [vmem:[%s3386_s0 + $0x2a8] ss:$12 sps:$4 sm:$0xff]  }
  0x71   :  { %954 = vmatmul.mubr.bf16.gmra.mrb[24].mxu0 %v2390_v45  ;;  %1146 = vmatmul.mubr.bf16.gmra.mrb[24].mxu1 %v2391_v46  ;;  %v2472_v45 = vld [vmem:[%s3386_s0 + $0x210] ss:$12 sps:$4 sm:$0xff]   ;;  %v2473_v46 = vld [vmem:[%s3386_s0 + $0x2c0] ss:$12 sps:$4 sm:$0xff]  }
  0x72   :  { %961 = vmatprep.mubr.bf16.mxu0 %v2392_v47  ;;  %1153 = vmatprep.mubr.bf16.mxu1 %v2394_v48  ;;  %v2474_v47 = vld [vmem:[%s3386_s0 + $0x22c] ss:$12 sps:$4 sm:$0xff]  }
  0x73   :  { %v2476_v48 = vld [vmem:[%s3386_s0 + $0x2d8] ss:$12 sps:$4 sm:$0xff]  }
  0x79   :  { %962 = vmatmul.mubr.bf16.gmra.mrb[28].mxu0 %v2396_v49  ;;  %1154 = vmatmul.mubr.bf16.gmra.mrb[28].mxu1 %v2397_v50  ;;  %v2477_v49 = vld [vmem:[%s3386_s0 + $0x228] ss:$12 sps:$4 sm:$0xff]   ;;  %v2478_v50 = vld [vmem:[%s3386_s0 + $0x2f0] ss:$12 sps:$4 sm:$0xff]  }
  0x7a   :  { %969 = vmatprep.mubr.bf16.mxu0 %v2399_v51  ;;  %2236 = vmatprep.mubr.msk.bf16.mxu1 %vm776_vm0, %v2401_v52 }
  0x81   :  { %970 = vmatmul.mubr.bf16.gmra.mrb[32].mxu0 %v2402_v53  ;;  %2237 = vmatmul.mubr.msk.bf16.vlgmr.msra.gmra.mrb[32].mxu1 %vm776_vm0, %v2403_v54 }
  0x82   :  { %977 = vmatprep.mubr.bf16.mxu0 %v2404_v55  ;;  %2240 = vmatprep.mubr.msk.bf16.mxu1 %vm776_vm0, %v2406_v56 }
  0x89   :  { %978 = vmatmul.mubr.bf16.gmra.mrb[36].mxu0 %v2407_v57  ;;  %2241 = vmatmul.mubr.msk.bf16.gmra.mrb[36].mxu1 %vm776_vm0, %v2408_v58 }
  0x8a   :  { %985 = vmatprep.mubr.bf16.mxu0 %v2409_v59  ;;  %2244 = vmatprep.mubr.msk.bf16.mxu1 %vm776_vm0, %v2411_v60 }
  0x91   :  { %986 = vmatmul.mubr.bf16.gmra.mrb[40].mxu0 %v2412_v61  ;;  %2245 = vmatmul.mubr.msk.bf16.gmra.mrb[40].mxu1 %vm776_vm0, %v2413_v62 }
  0x92   :  { %993 = vmatprep.mubr.bf16.mxu0 %v2414_v63  ;;  %2248 = vmatprep.mubr.msk.bf16.mxu1 %vm776_vm0, %v2416_v0 }
  0x99   :  { %994 = vmatmul.mubr.bf16.gmra.mrb[44].mxu0 %v2417_v1  ;;  %2249 = vmatmul.mubr.msk.bf16.gmra.mrb[44].mxu1 %vm776_vm0, %v2418_v2 }
  0x9a   :  { %1001 = vmatprep.mubr.bf16.mxu0 %v2419_v3  ;;  %2252 = vmatprep.mubr.msk.bf16.mxu1 %vm776_vm0, %v2421_v4 }
  0xa1   :  { %1002 = vmatmul.mubr.bf16.gmra.mrb[48].mxu0 %v2422_v5  ;;  %2253 = vmatmul.mubr.msk.bf16.gmra.mrb[48].mxu1 %vm776_vm0, %v2423_v6 }
  0xa2   :  { %1009 = vmatprep.mubr.bf16.mxu0 %v2424_v7  ;;  %2256 = vmatprep.mubr.msk.bf16.mxu1 %vm776_vm0, %v2426_v8 }
  0xa9   :  { %1010 = vmatmul.mubr.bf16.gmra.mrb[52].mxu0 %v2427_v9  ;;  %2257 = vmatmul.mubr.msk.bf16.gmra.mrb[52].mxu1 %vm776_vm0, %v2428_v10 }
  0xaa   :  { %1017 = vmatprep.mubr.bf16.mxu0 %v2429_v11  ;;  %2260 = vmatprep.mubr.msk.bf16.mxu1 %vm776_vm0, %v2431_v12 }
  0xb1   :  { %1018 = vmatmul.mubr.bf16.gmra.mrb[56].mxu0 %v2432_v13  ;;  %2261 = vmatmul.mubr.msk.bf16.gmra.mrb[56].mxu1 %vm776_vm0, %v2433_v14 }
  0xb2   :  { %1025 = vmatprep.mubr.bf16.mxu0 %v2434_v15  ;;  %2264 = vmatprep.mubr.msk.bf16.mxu1 %vm776_vm0, %v2436_v16 }
  0xb9   :  { %1026 = vmatmul.mubr.bf16.gmra.mrb[60].mxu0 %v2437_v17  ;;  %2265 = vmatmul.mubr.msk.bf16.gmra.mrb[60].mxu1 %vm776_vm0, %v2438_v18 }
  0xba   :  { %1033 = vmatprep.mubr.bf16.mxu0 %v2439_v19  ;;  %2268 = vmatprep.mubr.msk.bf16.mxu1 %vm776_vm0, %v2441_v20 }
  0xc1   :  { %1034 = vmatmul.mubr.bf16.gmra.mrb[64].mxu0 %v2442_v21  ;;  %2269 = vmatmul.mubr.msk.bf16.gmra.mrb[64].mxu1 %vm776_vm0, %v2443_v22 }
  0xc2   :  { %1041 = vmatprep.mubr.bf16.mxu0 %v2444_v23  ;;  %2272 = vmatprep.mubr.msk.bf16.mxu1 %vm776_vm0, %v2446_v24 }
  0xc9   :  { %1042 = vmatmul.mubr.bf16.gmra.mrb[68].mxu0 %v2447_v25  ;;  %2273 = vmatmul.mubr.msk.bf16.gmra.mrb[68].mxu1 %vm776_vm0, %v2448_v26 }
  0xca   :  { %1049 = vmatprep.mubr.bf16.mxu0 %v2449_v27  ;;  %2276 = vmatprep.mubr.msk.bf16.mxu1 %vm776_vm0, %v2451_v28 }
  0xd1   :  { %1050 = vmatmul.mubr.bf16.gmra.mrb[72].mxu0 %v2452_v29  ;;  %2277 = vmatmul.mubr.msk.bf16.gmra.mrb[72].mxu1 %vm776_vm0, %v2453_v30 }
  0xd2   :  { %1057 = vmatprep.mubr.bf16.mxu0 %v2454_v31  ;;  %2280 = vmatprep.mubr.msk.bf16.mxu1 %vm776_vm0, %v2456_v32 }
  0xd9   :  { %1058 = vmatmul.mubr.bf16.gmra.mrb[76].mxu0 %v2457_v33  ;;  %2281 = vmatmul.mubr.msk.bf16.gmra.mrb[76].mxu1 %vm776_vm0, %v2458_v34 }
  0xda   :  { %1065 = vmatprep.mubr.bf16.mxu0 %v2459_v35  ;;  %2284 = vmatprep.mubr.msk.bf16.mxu1 %vm776_vm0, %v2461_v36 }
  0xe1   :  { %1066 = vmatmul.mubr.bf16.gmra.mrb[80].mxu0 %v2462_v37  ;;  %2285 = vmatmul.mubr.msk.bf16.gmra.mrb[80].mxu1 %vm776_vm0, %v2463_v38 }
  0xe2   :  { %1073 = vmatprep.mubr.bf16.mxu0 %v2464_v39  ;;  %2288 = vmatprep.mubr.msk.bf16.mxu1 %vm776_vm0, %v2466_v40 }
  0xe9   :  { %1074 = vmatmul.mubr.bf16.gmra.mrb[84].mxu0 %v2467_v41  ;;  %2289 = vmatmul.mubr.msk.bf16.gmra.mrb[84].mxu1 %vm776_vm0, %v2468_v42 }
  0xea   :  { %1081 = vmatprep.mubr.bf16.mxu0 %v2469_v43  ;;  %2292 = vmatprep.mubr.msk.bf16.mxu1 %vm776_vm0, %v2471_v44 }
  0xf1   :  { %1082 = vmatmul.mubr.bf16.gmra.mrb[88].mxu0 %v2472_v45  ;;  %2293 = vmatmul.mubr.msk.bf16.gmra.mrb[88].mxu1 %vm776_vm0, %v2473_v46 }
  0xf2   :  { %1089 = vmatprep.mubr.bf16.mxu0 %v2474_v47  ;;  %2296 = vmatprep.mubr.msk.bf16.mxu1 %vm776_vm0, %v2476_v48 }
  0xf9   :  { %1090 = vmatmul.mubr.bf16.gmra.mrb[92].mxu0 %v2477_v49  ;;  %2297 = vmatmul.mubr.msk.bf16.gmra.mrb[92].mxu1 %vm776_vm0, %v2478_v50 }
 0x114   :  { %v2911_v51 = vpop.f32.mrb[0].mxu0  ;;  %v2913_v52 = vpop.f32.mrb[0].mxu1 }
 0x115   :  { %v909_v53 = vpop.f32.mrb[1].mxu0  ;;  %v1101_v54 = vpop.f32.mrb[1].mxu1 }
 0x116   :  { %v2915_v55 = vpop.f32.mrb[2].mxu0  ;;  %v2917_v56 = vpop.f32.mrb[2].mxu1  ;;  %v2974_v53 = vld [vmem:[%s3387_s2] ss:$0 sm:$0xff] }
 0x117   :  { %v912_v57 = vpop.f32.mrb[3].mxu0  ;;  %v1104_v58 = vpop.f32.mrb[3].mxu1 }
 0x118   :  { %v908_v57 = vadd.f32 %v2974_v53, %v2911_v51 }
 0x11c   :  { %v915_v59 = vpop.f32.mrb[4].mxu0  ;;  %v2919_v60 = vpop.f32.mrb[4].mxu1 }
 0x11d   :  { %v917_v61 = vpop.f32.mrb[5].mxu0  ;;  %v1109_v62 = vpop.f32.mrb[5].mxu1  ;;  %v916_v54 = vadd.f32 %v2974_v53, %v915_v59 }
 0x11e   :  { %v918_v63 = vpop.f32.mrb[6].mxu0  ;;  %v2921_v0 = vpop.f32.mrb[6].mxu1 }
 0x11f   :  { %v920_v1 = vpop.f32.mrb[7].mxu0  ;;  %v1112_v2 = vpop.f32.mrb[7].mxu1  ;;  %v919_v62 = vadd.f32 %v2974_v53, %v918_v63 }
 0x124   :  { %v2923_v3 = vpop.f32.mrb[8].mxu0  ;;  %v2925_v4 = vpop.f32.mrb[8].mxu1 }
 0x125   :  { %v925_v5 = vpop.f32.mrb[9].mxu0  ;;  %v1117_v6 = vpop.f32.mrb[9].mxu1 }
 0x126   :  { %v2927_v7 = vpop.f32.mrb[10].mxu0  ;;  %v2929_v8 = vpop.f32.mrb[10].mxu1  ;;  %v911_v6 = vadd.f32 %v2974_v53, %v2915_v55 }
 0x127   :  { %v928_v9 = vpop.f32.mrb[11].mxu0  ;;  %v1120_v10 = vpop.f32.mrb[11].mxu1 }
 0x12c   :  { %v2931_v11 = vpop.f32.mrb[12].mxu0  ;;  %v2933_v12 = vpop.f32.mrb[12].mxu1 }
 0x12d   :  { %v933_v13 = vpop.f32.mrb[13].mxu0  ;;  %v1125_v14 = vpop.f32.mrb[13].mxu1 }
 0x12e   :  { %v2935_v15 = vpop.f32.mrb[14].mxu0  ;;  %v2937_v16 = vpop.f32.mrb[14].mxu1 }
 0x12f   :  { %v936_v17 = vpop.f32.mrb[15].mxu0  ;;  %v1128_v18 = vpop.f32.mrb[15].mxu1 }
 0x134   :  { %v2939_v19 = vpop.f32.mrb[16].mxu0  ;;  %v2941_v20 = vpop.f32.mrb[16].mxu1 }
 0x135   :  { %v941_v21 = vpop.f32.mrb[17].mxu0  ;;  %v1133_v22 = vpop.f32.mrb[17].mxu1 }
 0x136   :  { %v2943_v23 = vpop.f32.mrb[18].mxu0  ;;  %v2945_v24 = vpop.f32.mrb[18].mxu1  ;;  %v932_v22 = vadd.f32 %v2974_v53, %v2931_v11  ;;  %v927_v11 = vadd.f32 %v2974_v53, %v2927_v7 }
 0x137   :  { %v944_v25 = vpop.f32.mrb[19].mxu0  ;;  %v1136_v26 = vpop.f32.mrb[19].mxu1 }
 0x138   :  { %v924_v25 = vadd.f32 %v2974_v53, %v2923_v3 }
 0x13c   :  { %v2947_v27 = vpop.f32.mrb[20].mxu0  ;;  %v2949_v28 = vpop.f32.mrb[20].mxu1 }
 0x13d   :  { %v949_v29 = vpop.f32.mrb[21].mxu0  ;;  %v1141_v30 = vpop.f32.mrb[21].mxu1 }
 0x13e   :  { %v2951_v31 = vpop.f32.mrb[22].mxu0  ;;  %v2953_v32 = vpop.f32.mrb[22].mxu1 }
 0x13f   :  { %v952_v33 = vpop.f32.mrb[23].mxu0  ;;  %v1144_v34 = vpop.f32.mrb[23].mxu1 }
 0x144   :  { %v2955_v35 = vpop.f32.mrb[24].mxu0  ;;  %v2957_v36 = vpop.f32.mrb[24].mxu1 }
 0x145   :  { %v957_v37 = vpop.f32.mrb[25].mxu0  ;;  %v1149_v38 = vpop.f32.mrb[25].mxu1 }
 0x146   :  { %v2959_v39 = vpop.f32.mrb[26].mxu0  ;;  %v2961_v40 = vpop.f32.mrb[26].mxu1  ;;  %v935_v37 = vadd.f32 %v2974_v53, %v2935_v15 }
 0x147   :  { %v960_v41 = vpop.f32.mrb[27].mxu0  ;;  %v1152_v42 = vpop.f32.mrb[27].mxu1 }
 0x14c   :  { %v2963_v43 = vpop.f32.mrb[28].mxu0  ;;  %v2965_v44 = vpop.f32.mrb[28].mxu1 }
 0x14d   :  { %v965_v45 = vpop.f32.mrb[29].mxu0  ;;  %v1157_v46 = vpop.f32.mrb[29].mxu1 }
 0x14e   :  { %v2967_v47 = vpop.f32.mrb[30].mxu0  ;;  %v2969_v48 = vpop.f32.mrb[30].mxu1 }
 0x14f   :  { %v968_v49 = vpop.f32.mrb[31].mxu0  ;;  %v1160_v50 = vpop.f32.mrb[31].mxu1 }
 0x154   :  { %v2979_v58 = vpop.f32.mrb[32].mxu0  ;;  %v2238_v61 = vpop.f32.mrb[32].mxu1 }
 0x155   :  { %v1205_v1 = vadd.f32 %v2238_v61, %v916_v54  ;;  %v973_v2 = vpop.f32.mrb[33].mxu0  ;;  %v1196_v5 = vpop.f32.mrb[33].mxu1 }
 0x156   :  { %v1197_v9 = vadd.f32 %v1196_v5, %v908_v57  ;;  %v2984_v10 = vpop.f32.mrb[34].mxu0  ;;  %v2239_v13 = vpop.f32.mrb[34].mxu1 }
 0x157   :  { %v1453_v14 = vmax.f32 %v1205_v1, 0.0  ;;  %v1208_v59 = vadd.f32 %v2239_v13, %v919_v62  ;;  %v976_v17 = vpop.f32.mrb[35].mxu0  ;;  %v1199_v18 = vpop.f32.mrb[35].mxu1 }
 0x158   :  { %v1451_v51 = vmax.f32 %v1197_v9, 0.0  ;;  %v1200_v21 = vadd.f32 %v1199_v18, %v911_v6  ;;  %v948_v18 = vadd.f32 %v2974_v53, %v2947_v27  ;;  %v943_v27 = vadd.f32 %v2974_v53, %v2943_v23 }
 0x159   :  { %1517 = vst [vmem:[%s3388_s3 + $0x10] sm:$0xff] %v1453_v14  ;;  %v1454_v63 = vmax.f32 %v1208_v59, 0.0  ;;  %v1909_v3 = vmul.f32 %v1453_v14, %v1453_v14 }
 0x15a   :  { %1515 = vst [vmem:[%s3388_s3] sm:$0xff] %v1451_v51  ;;  %v1452_v55 = vmax.f32 %v1200_v21, 0.0  ;;  %v1907_v26 = vmul.f32 %v1451_v51, %v1451_v51 }
 0x15b   :  { %1518 = vst [vmem:[%s3388_s3 + $0x18] sm:$0xff] %v1454_v63  ;;  %v1910_v57 = vmul.f32 %v1454_v63, %v1454_v63 }
 0x15c   :  { %1516 = vst [vmem:[%s3388_s3 + $0x8] sm:$0xff] %v1452_v55  ;;  %v1838_v29 = vadd.f32 %v1452_v55, %v1451_v51  ;;  %v1908_v30 = vmul.f32 %v1452_v55, %v1452_v55  ;;  %v3002_v33 = vpop.f32.mrb[36].mxu0  ;;  %v2242_v34 = vpop.f32.mrb[36].mxu1  ;;  %v940_v51 = vadd.f32 %v2974_v53, %v2939_v19 }
 0x15d   :  { %v1221_v38 = vadd.f32 %v2242_v34, %v932_v22  ;;  %v981_v41 = vpop.f32.mrb[37].mxu0  ;;  %v1212_v42 = vpop.f32.mrb[37].mxu1 }
 0x15e   :  { %v1839_v45 = vadd.f32 %v1838_v29, %v1453_v14  ;;  %v1971_v46 = vadd.f32 %v1908_v30, %v1907_v26  ;;  %v1213_v49 = vadd.f32 %v1212_v42, %v924_v25  ;;  %v3008_v50 = vpop.f32.mrb[38].mxu0  ;;  %v2243_v54 = vpop.f32.mrb[38].mxu1  ;;  %v951_v26 = vadd.f32 %v2974_v53, %v2951_v31 }
 0x15f   :  { %v1457_v61 = vmax.f32 %v1221_v38, 0.0  ;;  %v1224_v62 = vadd.f32 %v2243_v54, %v935_v37  ;;  %v984_v1 = vpop.f32.mrb[39].mxu0  ;;  %v1215_v2 = vpop.f32.mrb[39].mxu1 }
 0x160   :  { %v1972_v5 = vadd.f32 %v1971_v46, %v1909_v3  ;;  %v1455_v7 = vmax.f32 %v1213_v49, 0.0  ;;  %v1840_v6 = vadd.f32 %v1839_v45, %v1454_v63  ;;  %v1216_v9 = vadd.f32 %v1215_v2, %v927_v11 }
 0x161   :  { %1521 = vst [vmem:[%s3388_s3 + $0x30] sm:$0xff] %v1457_v61  ;;  %v1458_v15 = vmax.f32 %v1224_v62, 0.0  ;;  %v1913_v19 = vmul.f32 %v1457_v61, %v1457_v61 }
 0x162   :  { %1519 = vst [vmem:[%s3388_s3 + $0x20] sm:$0xff] %v1455_v7  ;;  %v1841_v13 = vadd.f32 %v1840_v6, %v1455_v7  ;;  %v1911_v14 = vmul.f32 %v1455_v7, %v1455_v7  ;;  %v1973_v59 = vadd.f32 %v1972_v5, %v1910_v57  ;;  %v1456_v17 = vmax.f32 %v1216_v9, 0.0 }
 0x163   :  { %1522 = vst [vmem:[%s3388_s3 + $0x38] sm:$0xff] %v1458_v15  ;;  %v1914_v3 = vmul.f32 %v1458_v15, %v1458_v15  ;;  %v964_v6 = vadd.f32 %v2974_v53, %v2963_v43  ;;  %v956_v9 = vadd.f32 %v2974_v53, %v2955_v35  ;;  %v959_v43 = vadd.f32 %v2974_v53, %v2959_v39 }
 0x164   :  { %v1974_v21 = vadd.f32 %v1973_v59, %v1911_v14  ;;  %1520 = vst [vmem:[%s3388_s3 + $0x28] sm:$0xff] %v1456_v17  ;;  %v1842_v63 = vadd.f32 %v1841_v13, %v1456_v17  ;;  %v1912_v55 = vmul.f32 %v1456_v17, %v1456_v17  ;;  %v3026_v22 = vpop.f32.mrb[40].mxu0  ;;  %v2246_v25 = vpop.f32.mrb[40].mxu1 }
 0x165   :  { %v1237_v29 = vadd.f32 %v2246_v25, %v948_v18  ;;  %v989_v30 = vpop.f32.mrb[41].mxu0  ;;  %v1228_v34 = vpop.f32.mrb[41].mxu1  ;;  %v967_v18 = vadd.f32 %v2974_v53, %v2967_v47 }
 0x166   :  { %v1843_v11 = vadd.f32 %v1842_v63, %v1457_v61  ;;  %v1975_v37 = vadd.f32 %v1974_v21, %v1912_v55  ;;  %v1229_v38 = vadd.f32 %v1228_v34, %v940_v51  ;;  %v3032_v41 = vpop.f32.mrb[42].mxu0  ;;  %v2247_v42 = vpop.f32.mrb[42].mxu1 }
 0x167   :  { %v1461_v45 = vmax.f32 %v1237_v29, 0.0  ;;  %v1240_v46 = vadd.f32 %v2247_v42, %v951_v26  ;;  %v992_v49 = vpop.f32.mrb[43].mxu0  ;;  %v1231_v54 = vpop.f32.mrb[43].mxu1 }
 0x168   :  { %v1976_v57 = vadd.f32 %v1975_v37, %v1913_v19  ;;  %v1459_v23 = vmax.f32 %v1229_v38, 0.0  ;;  %v1844_v62 = vadd.f32 %v1843_v11, %v1458_v15  ;;  %v1232_v1 = vadd.f32 %v1231_v54, %v943_v27 }
 0x169   :  { %1525 = vst [vmem:[%s3388_s3 + $0x50] sm:$0xff] %v1461_v45  ;;  %v1462_v31 = vmax.f32 %v1240_v46, 0.0  ;;  %v1917_v35 = vmul.f32 %v1461_v45, %v1461_v45 }
 0x16a   :  { %1523 = vst [vmem:[%s3388_s3 + $0x40] sm:$0xff] %v1459_v23  ;;  %v1845_v61 = vadd.f32 %v1844_v62, %v1459_v23  ;;  %v1915_v2 = vmul.f32 %v1459_v23, %v1459_v23  ;;  %v1977_v5 = vadd.f32 %v1976_v57, %v1914_v3  ;;  %v1460_v7 = vmax.f32 %v1232_v1, 0.0 }
 0x16b   :  { %1526 = vst [vmem:[%s3388_s3 + $0x58] sm:$0xff] %v1462_v31  ;;  %v1918_v30 = vmul.f32 %v1462_v31, %v1462_v31  ;;  %v980_v57 = vadd.f32 %v2974_v53, %v3002_v33  ;;  %v972_v23 = vadd.f32 %v2974_v53, %v2979_v58  ;;  %v975_v33 = vadd.f32 %v2974_v53, %v2984_v10 }
 0x16c   :  { %v1978_v15 = vadd.f32 %v1977_v5, %v1915_v2  ;;  %1524 = vst [vmem:[%s3388_s3 + $0x48] sm:$0xff] %v1460_v7  ;;  %v1846_v13 = vadd.f32 %v1845_v61, %v1460_v7  ;;  %v1916_v14 = vmul.f32 %v1460_v7, %v1460_v7  ;;  %v3050_v59 = vpop.f32.mrb[44].mxu0  ;;  %v2250_v17 = vpop.f32.mrb[44].mxu1  ;;  %v983_v5 = vadd.f32 %v2974_v53, %v3008_v50 }
 0x16d   :  { %v1253_v51 = vadd.f32 %v2250_v17, %v964_v6  ;;  %v997_v21 = vpop.f32.mrb[45].mxu0  ;;  %v1244_v63 = vpop.f32.mrb[45].mxu1 }
 0x16e   :  { %v1847_v55 = vadd.f32 %v1846_v13, %v1461_v45  ;;  %v1979_v25 = vadd.f32 %v1978_v15, %v1916_v14  ;;  %v1245_v27 = vadd.f32 %v1244_v63, %v956_v9  ;;  %v3056_v26 = vpop.f32.mrb[46].mxu0  ;;  %v2251_v29 = vpop.f32.mrb[46].mxu1 }
 0x16f   :  { %v1465_v34 = vmax.f32 %v1253_v51, 0.0  ;;  %v1256_v19 = vadd.f32 %v2251_v29, %v967_v18  ;;  %v1000_v11 = vpop.f32.mrb[47].mxu0  ;;  %v1247_v37 = vpop.f32.mrb[47].mxu1 }
 0x170   :  { %v1980_v38 = vadd.f32 %v1979_v25, %v1917_v35  ;;  %v1463_v39 = vmax.f32 %v1245_v27, 0.0  ;;  %v1848_v42 = vadd.f32 %v1847_v55, %v1462_v31  ;;  %v1248_v3 = vadd.f32 %v1247_v37, %v959_v43 }
 0x171   :  { %1529 = vst [vmem:[%s3388_s3 + $0x70] sm:$0xff] %v1465_v34  ;;  %v1466_v47 = vmax.f32 %v1256_v19, 0.0  ;;  %v1921_v58 = vmul.f32 %v1465_v34, %v1465_v34  ;;  %v996_v11 = vadd.f32 %v2974_v53, %v3050_v59  ;;  %v988_v37 = vadd.f32 %v2974_v53, %v3026_v22 }
 0x172   :  { %1527 = vst [vmem:[%s3388_s3 + $0x60] sm:$0xff] %v1463_v39  ;;  %v1849_v45 = vadd.f32 %v1848_v42, %v1463_v39  ;;  %v1919_v46 = vmul.f32 %v1463_v39, %v1463_v39  ;;  %v1981_v49 = vadd.f32 %v1980_v38, %v1918_v30  ;;  %v1464_v54 = vmax.f32 %v1248_v3, 0.0 }
 0x173   :  { %1530 = vst [vmem:[%s3388_s3 + $0x78] sm:$0xff] %v1466_v47  ;;  %v1922_v18 = vmul.f32 %v1466_v47, %v1466_v47  ;;  %v999_v59 = vadd.f32 %v2974_v53, %v3056_v26 }
 0x174   :  { %v1982_v62 = vadd.f32 %v1981_v49, %v1919_v46  ;;  %1528 = vst [vmem:[%s3388_s3 + $0x68] sm:$0xff] %v1464_v54  ;;  %v1850_v1 = vadd.f32 %v1849_v45, %v1464_v54  ;;  %v1920_v31 = vmul.f32 %v1464_v54, %v1464_v54  ;;  %v3074_v61 = vpop.f32.mrb[48].mxu0  ;;  %v2254_v2 = vpop.f32.mrb[48].mxu1  ;;  %v991_v45 = vadd.f32 %v2974_v53, %v3032_v41 }
 0x175   :  { %v1269_v7 = vadd.f32 %v2254_v2, %v980_v57  ;;  %v1005_v6 = vpop.f32.mrb[49].mxu0  ;;  %v1260_v9 = vpop.f32.mrb[49].mxu1 }
 0x176   :  { %v1851_v15 = vadd.f32 %v1850_v1, %v1465_v34  ;;  %v1983_v13 = vadd.f32 %v1982_v62, %v1920_v31  ;;  %v1261_v14 = vadd.f32 %v1260_v9, %v972_v23  ;;  %v3080_v17 = vpop.f32.mrb[50].mxu0  ;;  %v2255_v43 = vpop.f32.mrb[50].mxu1 }
 0x177   :  { %v1469_v51 = vmax.f32 %v1269_v7, 0.0  ;;  %v1272_v21 = vadd.f32 %v2255_v43, %v983_v5  ;;  %v1008_v63 = vpop.f32.mrb[51].mxu0  ;;  %v1263_v35 = vpop.f32.mrb[51].mxu1 }
 0x178   :  { %v1984_v55 = vadd.f32 %v1983_v13, %v1921_v58  ;;  %v1467_v10 = vmax.f32 %v1261_v14, 0.0  ;;  %v1852_v25 = vadd.f32 %v1851_v15, %v1466_v47  ;;  %v1264_v27 = vadd.f32 %v1263_v35, %v975_v33 }
 0x179   :  { %1533 = vst [vmem:[%s3388_s3 + $0x90] sm:$0xff] %v1469_v51  ;;  %v1470_v50 = vmax.f32 %v1272_v21, 0.0  ;;  %v1925_v57 = vmul.f32 %v1469_v51, %v1469_v51  ;;  %v1004_v21 = vadd.f32 %v2974_v53, %v3074_v61 }
 0x17a   :  { %1531 = vst [vmem:[%s3388_s3 + $0x80] sm:$0xff] %v1467_v10  ;;  %v1853_v29 = vadd.f32 %v1852_v25, %v1467_v10  ;;  %v1923_v30 = vmul.f32 %v1467_v10, %v1467_v10  ;;  %v1985_v34 = vadd.f32 %v1984_v55, %v1922_v18  ;;  %v1468_v19 = vmax.f32 %v1264_v27, 0.0 }
 0x17b   :  { %1534 = vst [vmem:[%s3388_s3 + $0x98] sm:$0xff] %v1470_v50  ;;  %v1926_v2 = vmul.f32 %v1470_v50, %v1470_v50  ;;  %v1007_v27 = vadd.f32 %v2974_v53, %v3080_v17 }
 0x17c   :  { %v1986_v38 = vadd.f32 %v1985_v34, %v1923_v30  ;;  %1532 = vst [vmem:[%s3388_s3 + $0x88] sm:$0xff] %v1468_v19  ;;  %v1854_v39 = vadd.f32 %v1853_v29, %v1468_v19  ;;  %v1924_v42 = vmul.f32 %v1468_v19, %v1468_v19  ;;  %v1011_v3 = vpop.f32.mrb[52].mxu0  ;;  %v2258_v47 = vpop.f32.mrb[52].mxu1 }
 0x17d   :  { %v1285_v46 = vadd.f32 %v2258_v47, %v996_v11  ;;  %v1013_v49 = vpop.f32.mrb[53].mxu0  ;;  %v1276_v54 = vpop.f32.mrb[53].mxu1 }
 0x17e   :  { %v1855_v22 = vadd.f32 %v1854_v39, %v1469_v51  ;;  %v1987_v23 = vadd.f32 %v1986_v38, %v1924_v42  ;;  %v1277_v62 = vadd.f32 %v1276_v54, %v988_v37  ;;  %v1014_v1 = vpop.f32.mrb[54].mxu0  ;;  %v2259_v31 = vpop.f32.mrb[54].mxu1  ;;  %v1012_v51 = vadd.f32 %v2974_v53, %v1011_v3 }
 0x17f   :  { %v1473_v33 = vmax.f32 %v1285_v46, 0.0  ;;  %v1288_v5 = vadd.f32 %v2259_v31, %v999_v59  ;;  %v1016_v7 = vpop.f32.mrb[55].mxu0  ;;  %v1279_v6 = vpop.f32.mrb[55].mxu1 }
 0x180   :  { %v1988_v9 = vadd.f32 %v1987_v23, %v1925_v57  ;;  %v1471_v58 = vmax.f32 %v1277_v62, 0.0  ;;  %v1856_v41 = vadd.f32 %v1855_v22, %v1470_v50  ;;  %v1280_v15 = vadd.f32 %v1279_v6, %v991_v45 }
 0x181   :  { %1537 = vst [vmem:[%s3388_s3 + $0xb0] sm:$0xff] %v1473_v33  ;;  %v1474_v26 = vmax.f32 %v1288_v5, 0.0  ;;  %v1015_v50 = vadd.f32 %v2974_v53, %v1014_v1  ;;  %v1929_v19 = vmul.f32 %v1473_v33, %v1473_v33 }
 0x182   :  { %1535 = vst [vmem:[%s3388_s3 + $0xa0] sm:$0xff] %v1471_v58  ;;  %v1857_v13 = vadd.f32 %v1856_v41, %v1471_v58  ;;  %v1927_v14 = vmul.f32 %v1471_v58, %v1471_v58  ;;  %v1989_v43 = vadd.f32 %v1988_v9, %v1926_v2  ;;  %v1472_v18 = vmax.f32 %v1280_v15, 0.0 }
 0x183   :  { %1538 = vst [vmem:[%s3388_s3 + $0xb8] sm:$0xff] %v1474_v26  ;;  %v1930_v42 = vmul.f32 %v1474_v26, %v1474_v26 }
 0x184   :  { %v1990_v63 = vadd.f32 %v1989_v43, %v1927_v14  ;;  %1536 = vst [vmem:[%s3388_s3 + $0xa8] sm:$0xff] %v1472_v18  ;;  %v1858_v35 = vadd.f32 %v1857_v13, %v1472_v18  ;;  %v1928_v55 = vmul.f32 %v1472_v18, %v1472_v18  ;;  %v1019_v10 = vpop.f32.mrb[56].mxu0  ;;  %v2262_v25 = vpop.f32.mrb[56].mxu1 }
 0x185   :  { %v1301_v29 = vadd.f32 %v2262_v25, %v1012_v51  ;;  %v1021_v30 = vpop.f32.mrb[57].mxu0  ;;  %v1292_v34 = vpop.f32.mrb[57].mxu1  ;;  %v1020_v31 = vadd.f32 %v2974_v53, %v1019_v10 }
 0x186   :  { %v1859_v11 = vadd.f32 %v1858_v35, %v1473_v33  ;;  %v1991_v61 = vadd.f32 %v1990_v63, %v1928_v55  ;;  %v1293_v37 = vadd.f32 %v1292_v34, %v1004_v21  ;;  %v1022_v38 = vpop.f32.mrb[58].mxu0  ;;  %v2263_v39 = vpop.f32.mrb[58].mxu1 }
 0x187   :  { %v1477_v3 = vmax.f32 %v1301_v29, 0.0  ;;  %v1304_v47 = vadd.f32 %v2263_v39, %v1015_v50  ;;  %v1024_v45 = vpop.f32.mrb[59].mxu0  ;;  %v1295_v59 = vpop.f32.mrb[59].mxu1  ;;  %v1023_v9 = vadd.f32 %v2974_v53, %v1022_v38 }
 0x188   :  { %v1992_v46 = vadd.f32 %v1991_v61, %v1929_v19  ;;  %v1475_v49 = vmax.f32 %v1293_v37, 0.0  ;;  %v1860_v54 = vadd.f32 %v1859_v11, %v1474_v26  ;;  %v1296_v17 = vadd.f32 %v1295_v59, %v1007_v27 }
 0x189   :  { %1541 = vst [vmem:[%s3388_s3 + $0xd0] sm:$0xff] %v1477_v3  ;;  %v1478_v57 = vmax.f32 %v1304_v47, 0.0  ;;  %v1933_v26 = vmul.f32 %v1477_v3, %v1477_v3 }
 0x18a   :  { %1539 = vst [vmem:[%s3388_s3 + $0xc0] sm:$0xff] %v1475_v49  ;;  %v1861_v22 = vadd.f32 %v1860_v54, %v1475_v49  ;;  %v1931_v23 = vmul.f32 %v1475_v49, %v1475_v49  ;;  %v1993_v62 = vadd.f32 %v1992_v46, %v1930_v42  ;;  %v1476_v1 = vmax.f32 %v1296_v17, 0.0 }
 0x18b   :  { %1542 = vst [vmem:[%s3388_s3 + $0xd8] sm:$0xff] %v1478_v57  ;;  %v1934_v21 = vmul.f32 %v1478_v57, %v1478_v57 }
 0x18c   :  { %v1994_v2 = vadd.f32 %v1993_v62, %v1931_v23  ;;  %1540 = vst [vmem:[%s3388_s3 + $0xc8] sm:$0xff] %v1476_v1  ;;  %v1862_v33 = vadd.f32 %v1861_v22, %v1476_v1  ;;  %v1932_v5 = vmul.f32 %v1476_v1, %v1476_v1  ;;  %v1027_v7 = vpop.f32.mrb[60].mxu0  ;;  %v2266_v6 = vpop.f32.mrb[60].mxu1 }
 0x18d   :  { %v1028_v58 = vadd.f32 %v2974_v53, %v1027_v7  ;;  %v1029_v41 = vpop.f32.mrb[61].mxu0  ;;  %v1308_v15 = vpop.f32.mrb[61].mxu1 }
 0x18e   :  { %v1863_v13 = vadd.f32 %v1862_v33, %v1477_v3  ;;  %v1995_v14 = vadd.f32 %v1994_v2, %v1932_v5  ;;  %v1309_v43 = vadd.f32 %v1308_v15, %v1020_v31  ;;  %v1030_v18 = vpop.f32.mrb[62].mxu0  ;;  %v2267_v51 = vpop.f32.mrb[62].mxu1 }
 0x18f   :  { %v1317_v63 = vadd.f32 %v2266_v6, %v1028_v58  ;;  %v1031_v35 = vadd.f32 %v2974_v53, %v1030_v18  ;;  %v1032_v55 = vpop.f32.mrb[63].mxu0  ;;  %v1311_v10 = vpop.f32.mrb[63].mxu1 }
 0x190   :  { %v1996_v25 = vadd.f32 %v1995_v14, %v1933_v26  ;;  %v1479_v27 = vmax.f32 %v1309_v43, 0.0  ;;  %v1864_v50 = vadd.f32 %v1863_v13, %v1478_v57  ;;  %v1312_v29 = vadd.f32 %v1311_v10, %v1023_v9 }
 0x191   :  { %v1481_v30 = vmax.f32 %v1317_v63, 0.0  ;;  %v1320_v34 = vadd.f32 %v2267_v51, %v1031_v35 }
 0x192   :  { %1543 = vst [vmem:[%s3388_s3 + $0xe0] sm:$0xff] %v1479_v27  ;;  %v1865_v19 = vadd.f32 %v1864_v50, %v1479_v27  ;;  %v1935_v11 = vmul.f32 %v1479_v27, %v1479_v27  ;;  %v1997_v61 = vadd.f32 %v1996_v25, %v1934_v21  ;;  %v1480_v37 = vmax.f32 %v1312_v29, 0.0 }
 0x193   :  { %1545 = vst [vmem:[%s3388_s3 + $0xf0] sm:$0xff] %v1481_v30  ;;  %v1482_v38 = vmax.f32 %v1320_v34, 0.0  ;;  %v1937_v54 = vmul.f32 %v1481_v30, %v1481_v30 }
 0x194   :  { %v1998_v39 = vadd.f32 %v1997_v61, %v1935_v11  ;;  %1544 = vst [vmem:[%s3388_s3 + $0xe8] sm:$0xff] %v1480_v37  ;;  %v1866_v42 = vadd.f32 %v1865_v19, %v1480_v37  ;;  %v1936_v3 = vmul.f32 %v1480_v37, %v1480_v37  ;;  %v1035_v47 = vpop.f32.mrb[64].mxu0  ;;  %v2270_v45 = vpop.f32.mrb[64].mxu1 }
 0x195   :  { %1546 = vst [vmem:[%s3388_s3 + $0xf8] sm:$0xff] %v1482_v38  ;;  %v1036_v59 = vadd.f32 %v2974_v53, %v1035_v47  ;;  %v1037_v46 = vpop.f32.mrb[65].mxu0  ;;  %v1324_v49 = vpop.f32.mrb[65].mxu1  ;;  %v1938_v33 = vmul.f32 %v1482_v38, %v1482_v38 }
 0x196   :  { %v1867_v17 = vadd.f32 %v1866_v42, %v1481_v30  ;;  %v1999_v57 = vadd.f32 %v1998_v39, %v1936_v3  ;;  %v1038_v22 = vpop.f32.mrb[66].mxu0  ;;  %v2271_v23 = vpop.f32.mrb[66].mxu1 }
 0x197   :  { %v1039_v62 = vadd.f32 %v2974_v53, %v1038_v22  ;;  %v1325_v1 = vadd.f32 %v1324_v49, %v1036_v59  ;;  %v1040_v31 = vpop.f32.mrb[67].mxu0  ;;  %v1327_v2 = vpop.f32.mrb[67].mxu1 }
 0x198   :  { %v2000_v5 = vadd.f32 %v1999_v57, %v1937_v54  ;;  %v1868_v7 = vadd.f32 %v1867_v17, %v1482_v38 }
 0x199   :  { %v1483_v6 = vmax.f32 %v1325_v1, 0.0  ;;  %v1328_v9 = vadd.f32 %v1327_v2, %v1039_v62 }
 0x19a   :  { %v2001_v58 = vadd.f32 %v2000_v5, %v1938_v33 }
 0x19b   :  { %1547 = vst [vmem:[%s3388_s3 + $0x100] sm:$0xff] %v1483_v6  ;;  %v1869_v41 = vadd.f32 %v1868_v7, %v1483_v6  ;;  %v1939_v15 = vmul.f32 %v1483_v6, %v1483_v6  ;;  %v1484_v26 = vmax.f32 %v1328_v9, 0.0 }
 0x19c   :  { %v1043_v13 = vpop.f32.mrb[68].mxu0  ;;  %v2274_v14 = vpop.f32.mrb[68].mxu1 }
 0x19d   :  { %v2002_v43 = vadd.f32 %v2001_v58, %v1939_v15  ;;  %1548 = vst [vmem:[%s3388_s3 + $0x108] sm:$0xff] %v1484_v26  ;;  %v1870_v18 = vadd.f32 %v1869_v41, %v1484_v26  ;;  %v1940_v51 = vmul.f32 %v1484_v26, %v1484_v26  ;;  %v1044_v21 = vadd.f32 %v2974_v53, %v1043_v13  ;;  %v1045_v63 = vpop.f32.mrb[69].mxu0  ;;  %v1340_v35 = vpop.f32.mrb[69].mxu1 }
 0x19e   :  { %v1046_v55 = vpop.f32.mrb[70].mxu0  ;;  %v2275_v10 = vpop.f32.mrb[70].mxu1 }
 0x19f   :  { %v2003_v25 = vadd.f32 %v2002_v43, %v1940_v51  ;;  %v1333_v27 = vadd.f32 %v2270_v45, %v1044_v21  ;;  %v1047_v50 = vadd.f32 %v2974_v53, %v1046_v55  ;;  %v1048_v29 = vpop.f32.mrb[71].mxu0  ;;  %v1343_v30 = vpop.f32.mrb[71].mxu1 }
 0x1a1   :  { %v1485_v34 = vmax.f32 %v1333_v27, 0.0  ;;  %v1336_v19 = vadd.f32 %v2271_v23, %v1047_v50 }
 0x1a3   :  { %1549 = vst [vmem:[%s3388_s3 + $0x110] sm:$0xff] %v1485_v34  ;;  %v1871_v11 = vadd.f32 %v1870_v18, %v1485_v34  ;;  %v1941_v61 = vmul.f32 %v1485_v34, %v1485_v34  ;;  %v1486_v37 = vmax.f32 %v1336_v19, 0.0  ;;  %v1100_v34 = vadd.f32 %v2974_v53, %v2913_v52 }
 0x1a4   :  { %v1051_v38 = vpop.f32.mrb[72].mxu0  ;;  %v3161_v39 = vpop.f32.mrb[72].mxu1  ;;  %v1111_v19 = vadd.f32 %v2974_v53, %v2921_v0  ;;  %v1103_v52 = vadd.f32 %v2974_v53, %v2917_v56 }
 0x1a5   :  { %v2004_v42 = vadd.f32 %v2003_v25, %v1941_v61  ;;  %1550 = vst [vmem:[%s3388_s3 + $0x118] sm:$0xff] %v1486_v37  ;;  %v1942_v3 = vmul.f32 %v1486_v37, %v1486_v37  ;;  %v1052_v47 = vadd.f32 %v2974_v53, %v1051_v38  ;;  %v1053_v45 = vpop.f32.mrb[73].mxu0  ;;  %v1872_v59 = vadd.f32 %v1871_v11, %v1486_v37  ;;  %v1356_v46 = vpop.f32.mrb[73].mxu1 }
 0x1a6   :  { %v1054_v49 = vpop.f32.mrb[74].mxu0  ;;  %v3167_v54 = vpop.f32.mrb[74].mxu1 }
 0x1a7   :  { %v1055_v17 = vadd.f32 %v2974_v53, %v1054_v49  ;;  %v1341_v57 = vadd.f32 %v1340_v35, %v1052_v47  ;;  %v2005_v22 = vadd.f32 %v2004_v42, %v1942_v3  ;;  %v1056_v23 = vpop.f32.mrb[75].mxu0  ;;  %v1359_v62 = vpop.f32.mrb[75].mxu1 }
 0x1a9   :  { %v1487_v1 = vmax.f32 %v1341_v57, 0.0  ;;  %v1344_v31 = vadd.f32 %v1343_v30, %v1055_v17 }
 0x1ab   :  { %1551 = vst [vmem:[%s3388_s3 + $0x120] sm:$0xff] %v1487_v1  ;;  %v1873_v2 = vadd.f32 %v1872_v59, %v1487_v1  ;;  %v1943_v33 = vmul.f32 %v1487_v1, %v1487_v1  ;;  %v1488_v5 = vmax.f32 %v1344_v31, 0.0 }
 0x1ac   :  { %v1059_v7 = vpop.f32.mrb[76].mxu0  ;;  %v3173_v6 = vpop.f32.mrb[76].mxu1 }
 0x1ad   :  { %v2006_v9 = vadd.f32 %v2005_v22, %v1943_v33  ;;  %1552 = vst [vmem:[%s3388_s3 + $0x128] sm:$0xff] %v1488_v5  ;;  %v1874_v58 = vadd.f32 %v1873_v2, %v1488_v5  ;;  %v1944_v41 = vmul.f32 %v1488_v5, %v1488_v5  ;;  %v1060_v15 = vadd.f32 %v2974_v53, %v1059_v7  ;;  %v1061_v26 = vpop.f32.mrb[77].mxu0  ;;  %v3179_v13 = vpop.f32.mrb[77].mxu1 }
 0x1ae   :  { %v1062_v43 = vpop.f32.mrb[78].mxu0  ;;  %v3181_v18 = vpop.f32.mrb[78].mxu1  ;;  %v1127_v26 = vadd.f32 %v2974_v53, %v2937_v16  ;;  %v1119_v16 = vadd.f32 %v2974_v53, %v2929_v8 }
 0x1af   :  { %v2007_v51 = vadd.f32 %v2006_v9, %v1944_v41  ;;  %v1349_v21 = vadd.f32 %v2274_v14, %v1060_v15  ;;  %v1063_v63 = vadd.f32 %v2974_v53, %v1062_v43  ;;  %v1064_v35 = vpop.f32.mrb[79].mxu0  ;;  %v3184_v55 = vpop.f32.mrb[79].mxu1  ;;  %v1108_v14 = vadd.f32 %v2974_v53, %v2919_v60 }
 0x1b0   :  { %v1116_v41 = vadd.f32 %v2974_v53, %v2925_v4  ;;  %v1124_v15 = vadd.f32 %v2974_v53, %v2933_v12 }
 0x1b1   :  { %v1489_v25 = vmax.f32 %v1349_v21, 0.0  ;;  %v1352_v27 = vadd.f32 %v2275_v10, %v1063_v63 }
 0x1b3   :  { %1553 = vst [vmem:[%s3388_s3 + $0x130] sm:$0xff] %v1489_v25  ;;  %v1875_v50 = vadd.f32 %v1874_v58, %v1489_v25  ;;  %v1945_v29 = vmul.f32 %v1489_v25, %v1489_v25  ;;  %v1490_v30 = vmax.f32 %v1352_v27, 0.0 }
 0x1b4   :  { %v1067_v11 = vpop.f32.mrb[80].mxu0  ;;  %v2286_v61 = vpop.f32.mrb[80].mxu1 }
 0x1b5   :  { %v2008_v37 = vadd.f32 %v2007_v51, %v1945_v29  ;;  %1554 = vst [vmem:[%s3388_s3 + $0x138] sm:$0xff] %v1490_v30  ;;  %v1876_v10 = vadd.f32 %v1875_v50, %v1490_v30  ;;  %v1946_v38 = vmul.f32 %v1490_v30, %v1490_v30  ;;  %v1068_v42 = vadd.f32 %v2974_v53, %v1067_v11  ;;  %v1069_v3 = vpop.f32.mrb[81].mxu0  ;;  %v1388_v47 = vpop.f32.mrb[81].mxu1 }
 0x1b6   :  { %v1397_v60 = vadd.f32 %v2286_v61, %v1108_v14  ;;  %v1389_v45 = vadd.f32 %v1388_v47, %v1100_v34  ;;  %v1070_v59 = vpop.f32.mrb[82].mxu0  ;;  %v2287_v0 = vpop.f32.mrb[82].mxu1 }
 0x1b7   :  { %v2009_v49 = vadd.f32 %v2008_v37, %v1946_v38  ;;  %v1357_v17 = vadd.f32 %v1356_v46, %v1068_v42  ;;  %v1071_v57 = vadd.f32 %v2974_v53, %v1070_v59  ;;  %v1400_v22 = vadd.f32 %v2287_v0, %v1111_v19  ;;  %v1072_v23 = vpop.f32.mrb[83].mxu0  ;;  %v1391_v1 = vpop.f32.mrb[83].mxu1 }
 0x1b8   :  { %v3202_v31 = vmax.f32 %v1397_v60, 0.0  ;;  %v3204_v2 = vmax.f32 %v1389_v45, 0.0  ;;  %v1392_v33 = vadd.f32 %v1391_v1, %v1103_v52  ;;  %v1132_v45 = vadd.f32 %v2974_v53, %v2941_v20 }
 0x1b9   :  { %v1491_v5 = vmax.f32 %v1357_v17, 0.0  ;;  %v1360_v7 = vadd.f32 %v1359_v62, %v1071_v57  ;;  %v3206_v9 = vmax.f32 %v1400_v22, 0.0  ;;  %v1140_v59 = vadd.f32 %v2974_v53, %v2949_v28 }
 0x1ba   :  { %1565 = vst [vmem:[%s3388_s3 + $0x190] sm:$0xff] %v3202_v31  ;;  %1563 = vst [vmem:[%s3388_s3 + $0x180] sm:$0xff] %v3204_v2  ;;  %v3216_v56 = vmax.f32 %v1392_v33, 0.0  ;;  %v1143_v0 = vadd.f32 %v2974_v53, %v2953_v32  ;;  %v1135_v32 = vadd.f32 %v2974_v53, %v2945_v24 }
 0x1bb   :  { %1555 = vst [vmem:[%s3388_s3 + $0x140] sm:$0xff] %v1491_v5  ;;  %v1877_v46 = vadd.f32 %v1876_v10, %v1491_v5  ;;  %v1947_v62 = vmul.f32 %v1491_v5, %v1491_v5  ;;  %v1492_v58 = vmax.f32 %v1360_v7, 0.0  ;;  %1566 = vst [vmem:[%s3388_s3 + $0x198] sm:$0xff] %v3206_v9 }
 0x1bc   :  { %1564 = vst [vmem:[%s3388_s3 + $0x188] sm:$0xff] %v3216_v56  ;;  %v1075_v43 = vpop.f32.mrb[84].mxu0  ;;  %v2290_v51 = vpop.f32.mrb[84].mxu1 }
 0x1bd   :  { %v2010_v21 = vadd.f32 %v2009_v49, %v1947_v62  ;;  %1556 = vst [vmem:[%s3388_s3 + $0x148] sm:$0xff] %v1492_v58  ;;  %v1878_v63 = vadd.f32 %v1877_v46, %v1492_v58  ;;  %v1948_v4 = vmul.f32 %v1492_v58, %v1492_v58  ;;  %v1076_v35 = vadd.f32 %v2974_v53, %v1075_v43  ;;  %v1077_v12 = vpop.f32.mrb[85].mxu0  ;;  %v1404_v25 = vpop.f32.mrb[85].mxu1 }
 0x1be   :  { %v1413_v27 = vadd.f32 %v2290_v51, %v1124_v15  ;;  %v1405_v50 = vadd.f32 %v1404_v25, %v1116_v41  ;;  %v1078_v29 = vpop.f32.mrb[86].mxu0  ;;  %v2291_v30 = vpop.f32.mrb[86].mxu1 }
 0x1bf   :  { %v2011_v34 = vadd.f32 %v2010_v21, %v1948_v4  ;;  %v1365_v14 = vadd.f32 %v3161_v39, %v1076_v35  ;;  %v1079_v19 = vadd.f32 %v2974_v53, %v1078_v29  ;;  %v1416_v11 = vadd.f32 %v2291_v30, %v1127_v26  ;;  %v1080_v61 = vpop.f32.mrb[87].mxu0  ;;  %v1407_v37 = vpop.f32.mrb[87].mxu1 }
 0x1c0   :  { %v3243_v10 = vmax.f32 %v1413_v27, 0.0  ;;  %v3245_v38 = vmax.f32 %v1405_v50, 0.0  ;;  %v1408_v42 = vadd.f32 %v1407_v37, %v1119_v16  ;;  %v1148_v16 = vadd.f32 %v2974_v53, %v2957_v36 }
 0x1c1   :  { %v1493_v3 = vmax.f32 %v1365_v14, 0.0  ;;  %v1368_v8 = vadd.f32 %v3167_v54, %v1079_v19  ;;  %v3248_v47 = vmax.f32 %v1416_v11, 0.0  ;;  %v1156_v27 = vadd.f32 %v2974_v53, %v2965_v44 }
 0x1c2   :  { %1569 = vst [vmem:[%s3388_s3 + $0x1b0] sm:$0xff] %v3243_v10  ;;  %1567 = vst [vmem:[%s3388_s3 + $0x1a0] sm:$0xff] %v3245_v38  ;;  %v3258_v39 = vmax.f32 %v1408_v42, 0.0  ;;  %v1159_v50 = vadd.f32 %v2974_v53, %v2969_v48  ;;  %v1151_v48 = vadd.f32 %v2974_v53, %v2961_v40 }
 0x1c3   :  { %1557 = vst [vmem:[%s3388_s3 + $0x150] sm:$0xff] %v1493_v3  ;;  %v1879_v52 = vadd.f32 %v1878_v63, %v1493_v3  ;;  %v1949_v54 = vmul.f32 %v1493_v3, %v1493_v3  ;;  %v1494_v60 = vmax.f32 %v1368_v8, 0.0  ;;  %1570 = vst [vmem:[%s3388_s3 + $0x1b8] sm:$0xff] %v3248_v47 }
 0x1c4   :  { %1568 = vst [vmem:[%s3388_s3 + $0x1a8] sm:$0xff] %v3258_v39  ;;  %v1083_v49 = vpop.f32.mrb[88].mxu0  ;;  %v2294_v17 = vpop.f32.mrb[88].mxu1 }
 0x1c5   :  { %v2012_v57 = vadd.f32 %v2011_v34, %v1949_v54  ;;  %1558 = vst [vmem:[%s3388_s3 + $0x158] sm:$0xff] %v1494_v60  ;;  %v1880_v22 = vadd.f32 %v1879_v52, %v1494_v60  ;;  %v1950_v20 = vmul.f32 %v1494_v60, %v1494_v60  ;;  %v1084_v23 = vadd.f32 %v2974_v53, %v1083_v49  ;;  %v1085_v28 = vpop.f32.mrb[89].mxu0  ;;  %v1420_v1 = vpop.f32.mrb[89].mxu1 }
 0x1c6   :  { %v1429_v33 = vadd.f32 %v2294_v17, %v1140_v59  ;;  %v1421_v5 = vadd.f32 %v1420_v1, %v1132_v45  ;;  %v1086_v7 = vpop.f32.mrb[90].mxu0  ;;  %v2295_v46 = vpop.f32.mrb[90].mxu1 }
 0x1c7   :  { %v2013_v62 = vadd.f32 %v2012_v57, %v1950_v20  ;;  %v1373_v58 = vadd.f32 %v3179_v13, %v1084_v23  ;;  %v1087_v41 = vadd.f32 %v2974_v53, %v1086_v7  ;;  %v1432_v15 = vadd.f32 %v2295_v46, %v1143_v0  ;;  %v1088_v26 = vpop.f32.mrb[91].mxu0  ;;  %v1423_v43 = vpop.f32.mrb[91].mxu1 }
 0x1c8   :  { %v3285_v51 = vmax.f32 %v1429_v33, 0.0  ;;  %v3287_v21 = vmax.f32 %v1421_v5, 0.0  ;;  %v1424_v63 = vadd.f32 %v1423_v43, %v1135_v32  ;;  %v1955_v32 = vmul.f32 %v3204_v2, %v3204_v2 }
 0x1c9   :  { %v1495_v4 = vmax.f32 %v1373_v58, 0.0  ;;  %v1376_v24 = vadd.f32 %v3184_v55, %v1087_v41  ;;  %v3290_v35 = vmax.f32 %v1432_v15, 0.0  ;;  %v1956_v7 = vmul.f32 %v3216_v56, %v3216_v56 }
 0x1ca   :  { %1573 = vst [vmem:[%s3388_s3 + $0x1d0] sm:$0xff] %v3285_v51  ;;  %1571 = vst [vmem:[%s3388_s3 + $0x1c0] sm:$0xff] %v3287_v21  ;;  %v3300_v13 = vmax.f32 %v1424_v63, 0.0  ;;  %v1957_v58 = vmul.f32 %v3202_v31, %v3202_v31  ;;  %v1958_v26 = vmul.f32 %v3206_v9, %v3206_v9 }
 0x1cb   :  { %1559 = vst [vmem:[%s3388_s3 + $0x160] sm:$0xff] %v1495_v4  ;;  %v1881_v12 = vadd.f32 %v1880_v22, %v1495_v4  ;;  %v1951_v55 = vmul.f32 %v1495_v4, %v1495_v4  ;;  %v1496_v25 = vmax.f32 %v1376_v24, 0.0  ;;  %1574 = vst [vmem:[%s3388_s3 + $0x1d8] sm:$0xff] %v3290_v35 }
 0x1cc   :  { %1572 = vst [vmem:[%s3388_s3 + $0x1c8] sm:$0xff] %v3300_v13  ;;  %v1091_v29 = vpop.f32.mrb[92].mxu0  ;;  %v2298_v30 = vpop.f32.mrb[92].mxu1 }
 0x1cd   :  { %v2014_v34 = vadd.f32 %v2013_v62, %v1951_v55  ;;  %1560 = vst [vmem:[%s3388_s3 + $0x168] sm:$0xff] %v1496_v25  ;;  %v1882_v14 = vadd.f32 %v1881_v12, %v1496_v25  ;;  %v1952_v36 = vmul.f32 %v1496_v25, %v1496_v25  ;;  %v1092_v19 = vadd.f32 %v2974_v53, %v1091_v29  ;;  %v1093_v44 = vpop.f32.mrb[93].mxu0  ;;  %v1436_v11 = vpop.f32.mrb[93].mxu1 }
 0x1ce   :  { %v1445_v61 = vadd.f32 %v2298_v30, %v1156_v27  ;;  %v1437_v37 = vadd.f32 %v1436_v11, %v1148_v16  ;;  %v1094_v42 = vpop.f32.mrb[94].mxu0  ;;  %v2299_v3 = vpop.f32.mrb[94].mxu1 }
 0x1cf   :  { %v2015_v8 = vadd.f32 %v2014_v34, %v1952_v36  ;;  %v1381_v52 = vadd.f32 %v3173_v6, %v1092_v19  ;;  %v1095_v54 = vadd.f32 %v2974_v53, %v1094_v42  ;;  %v1448_v60 = vadd.f32 %v2299_v3, %v1159_v50  ;;  %v1096_v45 = vpop.f32.mrb[95].mxu0  ;;  %v1439_v59 = vpop.f32.mrb[95].mxu1 }
 0x1d0   :  { %v1513_v0 = vmax.f32 %v1445_v61, 0.0  ;;  %v1511_v49 = vmax.f32 %v1437_v37, 0.0  ;;  %v1440_v17 = vadd.f32 %v1439_v59, %v1151_v48 }
 0x1d1   :  { %v1497_v57 = vmax.f32 %v1381_v52, 0.0  ;;  %v1384_v22 = vadd.f32 %v3181_v18, %v1095_v54  ;;  %v1514_v20 = vmax.f32 %v1448_v60, 0.0 }
 0x1d2   :  { %1577 = vst [vmem:[%s3388_s3 + $0x1f0] sm:$0xff] %v1513_v0  ;;  %1575 = vst [vmem:[%s3388_s3 + $0x1e0] sm:$0xff] %v1511_v49  ;;  %v1512_v40 = vmax.f32 %v1440_v17, 0.0 }
 0x1d3   :  { %1561 = vst [vmem:[%s3388_s3 + $0x170] sm:$0xff] %v1497_v57  ;;  %v1883_v53 = vadd.f32 %v1882_v14, %v1497_v57  ;;  %v1953_v6 = vmul.f32 %v1497_v57, %v1497_v57  ;;  %v1498_v23 = vmax.f32 %v1384_v22, 0.0  ;;  %1578 = vst [vmem:[%s3388_s3 + $0x1f8] sm:$0xff] %v1514_v20  ;;  %v1970_v54 = vmul.f32 %v1514_v20, %v1514_v20 }
 0x1d4   :  { %1576 = vst [vmem:[%s3388_s3 + $0x1e8] sm:$0xff] %v1512_v40  ;;  %v1968_v42 = vmul.f32 %v1512_v40, %v1512_v40 }
 0x1d5   :  { %v2016_v18 = vadd.f32 %v2015_v8, %v1953_v6  ;;  %1562 = vst [vmem:[%s3388_s3 + $0x178] sm:$0xff] %v1498_v23  ;;  %v1884_v28 = vadd.f32 %v1883_v53, %v1498_v23  ;;  %v1954_v1 = vmul.f32 %v1498_v23, %v1498_v23 }
 0x1d7   :  { %v1885_v33 = vadd.f32 %v1884_v28, %v3204_v2  ;;  %v2017_v5 = vadd.f32 %v2016_v18, %v1954_v1  ;;  %v1959_v2 = vmul.f32 %v3245_v38, %v3245_v38 }
 0x1d9   :  { %v1886_v46 = vadd.f32 %v1885_v33, %v3216_v56  ;;  %v2018_v62 = vadd.f32 %v2017_v5, %v1955_v32  ;;  %v1960_v56 = vmul.f32 %v3258_v39, %v3258_v39 }
 0x1db   :  { %v1887_v41 = vadd.f32 %v1886_v46, %v3202_v31  ;;  %v2019_v15 = vadd.f32 %v2018_v62, %v1956_v7  ;;  %v1961_v31 = vmul.f32 %v3243_v10, %v3243_v10 }
 0x1dd   :  { %v1888_v43 = vadd.f32 %v1887_v41, %v3206_v9  ;;  %v2020_v63 = vadd.f32 %v2019_v15, %v1957_v58  ;;  %v1962_v9 = vmul.f32 %v3248_v47, %v3248_v47 }
 0x1df   :  { %v1889_v4 = vadd.f32 %v1888_v43, %v3245_v38  ;;  %v2021_v24 = vadd.f32 %v2020_v63, %v1958_v26  ;;  %v1963_v38 = vmul.f32 %v3287_v21, %v3287_v21 }
 0x1e1   :  { %v1890_v12 = vadd.f32 %v1889_v4, %v3258_v39  ;;  %v2022_v55 = vadd.f32 %v2021_v24, %v1959_v2  ;;  %v1964_v39 = vmul.f32 %v3300_v13, %v3300_v13 }
 0x1e3   :  { %v2023_v25 = vadd.f32 %v2022_v55, %v1960_v56  ;;  %v1891_v16 = vadd.f32 %v1890_v12, %v3243_v10  ;;  %v1965_v10 = vmul.f32 %v3285_v51, %v3285_v51 }
 0x1e5   :  { %v1892_v27 = vadd.f32 %v1891_v16, %v3248_v47  ;;  %v2024_v50 = vadd.f32 %v2023_v25, %v1961_v31  ;;  %v1966_v47 = vmul.f32 %v3290_v35, %v3290_v35 }
 0x1e7   :  { %v1893_v29 = vadd.f32 %v1892_v27, %v3287_v21  ;;  %v2025_v30 = vadd.f32 %v2024_v50, %v1962_v9  ;;  %v1967_v21 = vmul.f32 %v1511_v49, %v1511_v49 }
 0x1e9   :  { %v1894_v34 = vadd.f32 %v1893_v29, %v3300_v13  ;;  %v2026_v14 = vadd.f32 %v2025_v30, %v1963_v38  ;;  %v1969_v13 = vmul.f32 %v1513_v0, %v1513_v0 }
 0x1eb   :  { %v1895_v36 = vadd.f32 %v1894_v34, %v3285_v51  ;;  %v2027_v19 = vadd.f32 %v2026_v14, %v1964_v39 }
 0x1ed   :  { %v1896_v44 = vadd.f32 %v1895_v36, %v3290_v35  ;;  %v2028_v11 = vadd.f32 %v2027_v19, %v1965_v10 }
 0x1ef   :  { %v1897_v48 = vadd.f32 %v1896_v44, %v1511_v49  ;;  %v2029_v61 = vadd.f32 %v2028_v11, %v1966_v47 }
 0x1f1   :  { %v1898_v37 = vadd.f32 %v1897_v48, %v1512_v40  ;;  %v2030_v3 = vadd.f32 %v2029_v61, %v1967_v21 }
 0x1f3   :  { %v1899_v8 = vadd.f32 %v1898_v37, %v1513_v0  ;;  %v2031_v52 = vadd.f32 %v2030_v3, %v1968_v42 }
 0x1f5   :  { %v1900_v60 = vadd.f32 %v1899_v8, %v1514_v20  ;;  %v2032_v45 = vadd.f32 %v2031_v52, %v1969_v13 }
 0x1f7   :  { %v1901_v51 = vrot.slane %v1900_v60, 4  ;;  %v2033_v59 = vadd.f32 %v2032_v45, %v1970_v54 }
 0x1f9   :  { %v1902_v17 = vadd.f32 %v1901_v51, %v1900_v60  ;;  %v2034_v57 = vrot.slane %v2033_v59, 4 }
 0x1fb   :  { %v1903_v22 = vrot.slane %v1902_v17, 2  ;;  %v2035_v53 = vadd.f32 %v2034_v57, %v2033_v59 }
 0x1fd   :  { %v1904_v35 = vadd.f32 %v1903_v22, %v1902_v17  ;;  %v2036_v6 = vrot.slane %v2035_v53, 2 }
 0x1ff   :  { %v1905_v23 = vrot.slane %v1904_v35, 1  ;;  %v2037_v49 = vadd.f32 %v2036_v6, %v2035_v53 }
 0x201   :  { %v2038_v18 = vrot.slane %v2037_v49, 1  ;;  %v1906_v40 = vadd.f32 %v1905_v23, %v1904_v35 }
 0x203   :  { %v2039_v28 = vadd.f32 %v2038_v18, %v2037_v49 }
 0x205   :  { %v2041_v1 = vsel %vm2040_vm1, %v1906_v40, %v2039_v28 }
 0x206   :  { %2042 = vst [vmem:[%s3389_s4] sm:$0x3] %v2041_v1 }

</bundles_post_ra>
